<compile_context>
chip_gen: v6e
topology: v6e:2x2x1
jax: 0.10.0
libtpu: 0.0.40
codegen_flags: <defaults>
</compile_context>

<pallas_src>
import functools

import jax
import jax.numpy as jnp
from jax.experimental import pallas as pl
from jax.experimental.pallas import tpu as pltpu

IMAGE_EMBEDDING_DIM = 512   # D
NUM_BRANCHES = 6
LN_EPS = 1e-5               # torch.nn.LayerNorm default


def _branch_kernel(x_ref, wconvt_ref, bconv_ref, wfc_ref, bfc_ref,
                   gamma_ref, beta_ref, wd_ref, bd_ref, out_ref, acc_ref,
                   *, channels, inv_hw):
    """Grid = (kept_branch, hw_chunk).

    x_ref      : (1, B, C, T)  bf16   (NCHW native, T = hw_tile on lanes)
    wconvt_ref : (1, E, C)     f32    (stem weight, pre-transposed on host)
    bconv_ref  : (1, E, 1)     f32
    wfc_ref    : (1, E, D)     bf16   bfc_ref  : (1, 1, D) f32
    gamma_ref  : (1, 1, D)     f32    beta_ref : (1, 1, D) f32
    wd_ref     : (1, D, D)     bf16   bd_ref   : (1, 1, D) f32
    out_ref    : (1, B, D)     f32    (resident across the hw axis)
    acc_ref    : (B, E)        f32    scratch: pooled-SUM accumulator, [B, E]
                                      orientation (lane-dense E, no finalize
                                      transpose needed)
    """
    t = pl.program_id(1)

    @pl.when(t == 0)
    def _init():
        acc_ref[...] = jnp.zeros_like(acc_ref)

    # --- backbone stem on this HW chunk: 1x1 conv + ReLU + partial sum -----
    # Channel contraction on the VPU: C broadcast-FMA passes over [B, E, T].
    x32 = x_ref[0].astype(jnp.float32)           # [B, C, T]
    wt = wconvt_ref[0]                           # [E, C] f32
    h = x32[:, 0:1, :] * wt[None, :, 0:1]        # [B, E, T]
    for c in range(1, channels):                 # C is tiny (3-4) & static
        h = h + x32[:, c:c + 1, :] * wt[None, :, c:c + 1]
    h = jnp.maximum(h + bconv_ref[0][None, :, :], 0.0)          # bias + ReLU
    acc_ref[...] += jnp.sum(h, axis=-1)          # one lane-dense [B, E] add

    # --- head (fc -> LayerNorm -> dropout(identity) -> dense) at last chunk
    @pl.when(t == pl.num_programs(1) - 1)
    def _finalize():
        pooled = acc_ref[...] * inv_hw                          # [B, E] f32
        feat = jnp.dot(pooled.astype(jnp.bfloat16), wfc_ref[0],
                       preferred_element_type=jnp.float32) + bfc_ref[0]
        mu = jnp.mean(feat, axis=-1, keepdims=True)
        xc = feat - mu
        var = jnp.mean(xc * xc, axis=-1, keepdims=True)
        feat_n = xc * jax.lax.rsqrt(var + LN_EPS)
        feat_n = feat_n * gamma_ref[0] + beta_ref[0]
        # dropout(p=0.5): identity in eval mode
        out = jnp.dot(feat_n.astype(jnp.bfloat16), wd_ref[0],
                      preferred_element_type=jnp.float32) + bd_ref[0]
        out_ref[0] = out.astype(out_ref.dtype)


def _pick_hw_tile(hw, batch, channels, embed, budget_bytes):
    """Largest multiple of 128 that divides HW whose per-step footprint
    (double-buffered bf16 x tile + f32 stem intermediate) fits the budget."""
    if hw % 128 != 0:
        return hw                     # full-extent block (small inputs)
    best = 128
    t = 128
    while t <= hw:
        if hw % t == 0:
            footprint = 2 * (batch * channels * t * 2) + batch * embed * t * 4
            if footprint <= budget_bytes:
                best = t
        t += 128
    return best


def six_vision_encoder(xs_nchw, params, mask_branch=(), hw_tile=None):
    """xs_nchw: [6, B, C, H, W] float32 (six NCHW images, stacked).

    Returns combined features [B, K*D] where K = 6 - len(mask_branch),
    matching torch.cat(LIST_FEATURES, dim=1).
    """
    n, B, C, H, W = xs_nchw.shape
    assert n == NUM_BRANCHES
    HW = H * W
    D = IMAGE_EMBEDDING_DIM
    E = params["wconv"].shape[-1]

    # Skip masked branches entirely (no wasted HBM traffic / compute).
    keep = tuple(b for b in range(NUM_BRANCHES) if b not in mask_branch)
    k = len(keep)
    assert k >= 1
    if k == NUM_BRANCHES:
        take = lambda a: a
    else:
        idx = jnp.asarray(keep, dtype=jnp.int32)
        take = lambda a: jnp.take(a, idx, axis=0)

    # Chip-aware VMEM budget (v7x: 64 MiB/TC; v5e/v6e: 128 MiB). Leave ~25%
    # headroom rather than requesting the whole physical VMEM.
    try:
        vmem_cap = int(pltpu.get_tpu_info().vmem_capacity_bytes)
    except Exception:
        vmem_cap = 64 << 20           # conservative default (v7x-sized)
    vmem_budget = (vmem_cap * 3) // 4

    # Per-branch weight / output / accumulator footprints (double-buffered).
    wts_b = E * C * 4 + E * 4 + E * D * 2 + 4 * D * 4 + D * D * 2
    out_b = B * D * 4
    acc_b = max(B, 8) * max(E, 128) * 4
    stream_budget = max(2 << 20, vmem_budget - 2 * wts_b - 2 * out_b
                        - acc_b - (8 << 20))
    if hw_tile is None:
        hw_tile = _pick_hw_tile(HW, B, C, E, stream_budget)
    assert HW % hw_tile == 0, (HW, hw_tile)
    assert hw_tile == HW or hw_tile % 128 == 0, hw_tile
    n_hw = HW // hw_tile

    # Native NCHW layout; only a (free) reshape.  Stream x in bf16 (halves
    # HBM bytes); the stem accumulates in f32.
    # TODO(synk): for C<8 the (C, hw_tile) sublane padding could be removed by
    # packing to [k, B*C, HW] + strided sublane loads; skipped to keep the
    # block layout simple.
    x = take(xs_nchw).reshape(k, B, C, HW).astype(jnp.bfloat16)
    wconv_t = jnp.transpose(take(params["wconv"]), (0, 2, 1))     # (k, E, C) f32
    bconv = take(params["bconv"]).reshape(k, E, 1)                # f32
    wfc = take(params["wfc"]).astype(jnp.bfloat16)                # (k, E, D)
    bfc = take(params["bfc"]).reshape(k, 1, D)
    gamma = take(params["gamma"]).reshape(k, 1, D)
    beta = take(params["beta"]).reshape(k, 1, D)
    wd = take(params["wd"]).astype(jnp.bfloat16)                  # (k, D, D)
    bd = take(params["bd"]).reshape(k, 1, D)

    kernel = functools.partial(_branch_kernel, channels=C, inv_hw=1.0 / HW)

    w_map = lambda i, t: (i, 0, 0)
    in_specs = [
        pl.BlockSpec((1, B, C, hw_tile), lambda i, t: (i, 0, 0, t)),
        pl.BlockSpec((1, E, C), w_map),     # wconv^T (f32, VPU stem)
        pl.BlockSpec((1, E, 1), w_map),     # bconv
        pl.BlockSpec((1, E, D), w_map),     # wfc (bf16)
        pl.BlockSpec((1, 1, D), w_map),     # bfc
        pl.BlockSpec((1, 1, D), w_map),     # gamma
        pl.BlockSpec((1, 1, D), w_map),     # beta
        pl.BlockSpec((1, D, D), w_map),     # wd (bf16)
        pl.BlockSpec((1, 1, D), w_map),     # bd
    ]
    out_specs = pl.BlockSpec((1, B, D), lambda i, t: (i, 0, 0))

    xtile_b = B * C * hw_tile * 2
    tmp_b = B * E * hw_tile * 4             # f32 stem intermediate [B, E, T]
    need = 2 * (2 * xtile_b + wts_b + out_b) + acc_b + tmp_b + (4 << 20)
    vmem_limit = int(min(max(need, 16 << 20), vmem_budget))

    flops = k * B * (2 * C * E * HW + 2 * E * D + 2 * D * D + 10 * D)
    bytes_accessed = (x.size * 2 + wconv_t.size * 4 + bconv.size * 4
                      + wfc.size * 2 + wd.size * 2
                      + (bfc.size + gamma.size + beta.size + bd.size) * 4
                      + k * B * D * 4)

    out = pl.pallas_call(
        kernel,
        out_shape=jax.ShapeDtypeStruct((k, B, D), jnp.float32),
        grid_spec=pltpu.PrefetchScalarGridSpec(
            num_scalar_prefetch=0,
            grid=(k, n_hw),
            in_specs=in_specs,
            out_specs=out_specs,
            scratch_shapes=[pltpu.VMEM((B, E), jnp.float32)],
        ),
        compiler_params=pltpu.CompilerParams(
            dimension_semantics=("parallel", "arbitrary"),
            vmem_limit_bytes=vmem_limit),
        cost_estimate=pl.CostEstimate(
            flops=int(flops), transcendentals=int(k * B),
            bytes_accessed=int(bytes_accessed)),
    )(x, wconv_t, bconv, wfc, bfc, gamma, beta, wd, bd)

    # torch.cat over kept branches == one fused transpose+reshape.
    return jnp.transpose(out, (1, 0, 2)).reshape(B, k * D)


def init_params(key, C, E, D=IMAGE_EMBEDDING_DIM, n=NUM_BRANCHES):
    ks = jax.random.split(key, 6)
    s = 0.02
    return {
        "wconv": s * jax.random.normal(ks[0], (n, C, E), jnp.float32),
        "bconv": 0.01 * jax.random.normal(ks[1], (n, E), jnp.float32),
        "wfc":   s * jax.random.normal(ks[2], (n, E, D), jnp.float32),
        "bfc":   s * jax.random.normal(ks[3], (n, D), jnp.float32),
        "gamma": jnp.ones((n, D), jnp.float32),
        "beta":  jnp.zeros((n, D), jnp.float32),
        "wd":    s * jax.random.normal(ks[4], (n, D, D), jnp.float32),
        "bd":    s * jax.random.normal(ks[5], (n, D), jnp.float32),
    }


def _reference(xs_nchw, params, mask_branch=()):
    """Pure-JAX reference mirroring the kernel's math (bf16 x / head weights,
    f32 stem accumulation and LayerNorm)."""
    n, B, C, H, W = xs_nchw.shape
    HW = H * W
    x = xs_nchw.reshape(n, B, C, HW).astype(jnp.bfloat16).astype(jnp.float32)
    wt = jnp.transpose(params["wconv"], (0, 2, 1))                 # (n, E, C)
    feats = []
    for i in range(n):
        h = jnp.einsum("ec,bct->bet", wt[i], x[i])                 # f32
        h = jnp.maximum(h + params["bconv"][i][None, :, None], 0.0)
        pooled = jnp.sum(h, axis=-1) * (1.0 / HW)                  # [B, E]
        feat = jnp.dot(pooled.astype(jnp.bfloat16),
                       params["wfc"][i].astype(jnp.bfloat16),
                       preferred_element_type=jnp.float32) + params["bfc"][i]
        mu = jnp.mean(feat, axis=-1, keepdims=True)
        xc = feat - mu
        var = jnp.mean(xc * xc, axis=-1, keepdims=True)
        f = xc * jax.lax.rsqrt(var + LN_EPS)
        f = f * params["gamma"][i] + params["beta"][i]
        out = jnp.dot(f.astype(jnp.bfloat16),
                      params["wd"][i].astype(jnp.bfloat16),
                      preferred_element_type=jnp.float32) + params["bd"][i]
        feats.append(out)
    keep = [i for i in range(n) if i not in mask_branch]
    return jnp.concatenate([feats[i] for i in keep], axis=1)


if __name__ == "__main__":
    key = jax.random.PRNGKey(0)
    B, C, H, W = 2, 4, 16, 16       # six small NCHW images
    E = 64                          # synthetic backbone embed_size

    k_x, k_p = jax.random.split(key)
    xs = jax.random.normal(k_x, (NUM_BRANCHES, B, C, H, W), jnp.float32)
    params = init_params(k_p, C=C, E=E)

    # hw_tile=128 -> 2 spatial chunks per branch: exercises the streaming
    # accumulator + pl.when finalize path.
    fn = jax.jit(functools.partial(six_vision_encoder, mask_branch=(),
                                   hw_tile=128))
    out = jax.block_until_ready(fn(xs, params))
    assert out.shape == (B, NUM_BRANCHES * IMAGE_EMBEDDING_DIM), out.shape

    ref = _reference(xs, params)
    max_err = float(jnp.max(jnp.abs(out - ref)))
    assert jnp.allclose(out, ref, atol=2e-3, rtol=2e-3), max_err

    # branch-masking path: masked branches are skipped inside the kernel.
    fn_m = jax.jit(functools.partial(six_vision_encoder, mask_branch=(1, 4),
                                     hw_tile=128))
    out_m = jax.block_until_ready(fn_m(xs, params))
    ref_m = _reference(xs, params, mask_branch=(1, 4))
    assert out_m.shape == (B, 4 * IMAGE_EMBEDDING_DIM), out_m.shape
    assert jnp.allclose(out_m, ref_m, atol=2e-3, rtol=2e-3)

    # budget-aware hw_tile selection path (no explicit tile).
    fn_auto = jax.jit(functools.partial(six_vision_encoder, mask_branch=()))
    out_auto = jax.block_until_ready(fn_auto(xs, params))
    assert jnp.allclose(out_auto, ref, atol=2e-3, rtol=2e-3)

    print("KERNEL_OK")
</pallas_src>

<mosaic_0001>
module attributes {stable_mosaic.version = 11 : i64} {
  func.func @_branch_kernel(%arg0: i32, %arg1: i32, %arg2: memref<1x2x4x128xbf16, #tpu.memory_space<vmem>>, %arg3: memref<1x64x4xf32, #tpu.memory_space<vmem>>, %arg4: memref<1x64x1xf32, #tpu.memory_space<vmem>>, %arg5: memref<1x64x512xbf16, #tpu.memory_space<vmem>>, %arg6: memref<1x1x512xf32, #tpu.memory_space<vmem>>, %arg7: memref<1x1x512xf32, #tpu.memory_space<vmem>>, %arg8: memref<1x1x512xf32, #tpu.memory_space<vmem>>, %arg9: memref<1x512x512xbf16, #tpu.memory_space<vmem>>, %arg10: memref<1x1x512xf32, #tpu.memory_space<vmem>>, %arg11: memref<1x2x512xf32, #tpu.memory_space<vmem>>, %arg12: memref<2x64xf32, #tpu.memory_space<vmem>>) attributes {dimension_semantics = [#tpu.dimension_semantics<parallel>, #tpu.dimension_semantics<arbitrary>], iteration_bounds = array<i64: 6, 2>, scalar_prefetch = 0 : i64, scratch_operands = 1 : i64, tpu.core_type = #tpu.core_type<tc>, window_params = [{transform_indices = @transform_0, window_bounds = array<i64: 1, 2, 4, 128>}, {transform_indices = @transform_1, window_bounds = array<i64: 1, 64, 4>}, {transform_indices = @transform_2, window_bounds = array<i64: 1, 64, 1>}, {transform_indices = @transform_3, window_bounds = array<i64: 1, 64, 512>}, {transform_indices = @transform_4, window_bounds = array<i64: 1, 1, 512>}, {transform_indices = @transform_5, window_bounds = array<i64: 1, 1, 512>}, {transform_indices = @transform_6, window_bounds = array<i64: 1, 1, 512>}, {transform_indices = @transform_7, window_bounds = array<i64: 1, 512, 512>}, {transform_indices = @transform_8, window_bounds = array<i64: 1, 1, 512>}, {transform_indices = @transform_9, window_bounds = array<i64: 1, 2, 512>}]} {
    %c0_i32 = arith.constant 0 : i32
    %0 = arith.cmpi eq, %arg1, %c0_i32 : i32
    %1 = arith.extui %0 : i1 to i32
    %c0_i32_0 = arith.constant 0 : i32
    %2 = arith.cmpi ne, %1, %c0_i32_0 : i32
    scf.if %2 {
      %cst_16 = arith.constant 0.000000e+00 : f32
      %49 = vector.broadcast %cst_16 : f32 to vector<2x64xf32>
      %c0_17 = arith.constant 0 : index
      %c0_18 = arith.constant 0 : index
      %50 = vector.load %arg12[%c0_17, %c0_18] : memref<2x64xf32, #tpu.memory_space<vmem>>, vector<2x64xf32>
      tpu.vector_store %arg12[%c0_17, %c0_18], %49 {strides = array<i32>} : memref<2x64xf32, #tpu.memory_space<vmem>>, vector<2x64xf32>,
    } else {
    }
    %c0 = arith.constant 0 : index
    %c0_1 = arith.constant 0 : index
    %c0_2 = arith.constant 0 : index
    %c0_3 = arith.constant 0 : index
    %3 = vector.load %arg2[%c0, %c0_1, %c0_2, %c0_3] : memref<1x2x4x128xbf16, #tpu.memory_space<vmem>>, vector<1x2x4x128xbf16>
    %4 = vector.shape_cast %3 : vector<1x2x4x128xbf16> to vector<2x4x128xbf16>
    %5 = arith.extf %4 : vector<2x4x128xbf16> to vector<2x4x128xf32>
    %c0_4 = arith.constant 0 : index
    %c0_5 = arith.constant 0 : index
    %c0_6 = arith.constant 0 : index
    %6 = vector.load %arg3[%c0_4, %c0_5, %c0_6] : memref<1x64x4xf32, #tpu.memory_space<vmem>>, vector<1x64x4xf32>
    %7 = vector.shape_cast %6 : vector<1x64x4xf32> to vector<64x4xf32>
    %8 = vector.extract_strided_slice %5 {offsets = [0, 0, 0], sizes = [2, 1, 128], strides = [1, 1, 1]} : vector<2x4x128xf32> to vector<2x1x128xf32>
    %9 = vector.extract_strided_slice %7 {offsets = [0, 0], sizes = [64, 1], strides = [1, 1]} : vector<64x4xf32> to vector<64x1xf32>
    %10 = vector.shape_cast %9 : vector<64x1xf32> to vector<1x64x1xf32>
    %11 = vector.broadcast %8 : vector<2x1x128xf32> to vector<2x64x128xf32>
    %12 = vector.broadcast %10 : vector<1x64x1xf32> to vector<2x64x128xf32>
    %13 = arith.mulf %11, %12 : vector<2x64x128xf32>
    %14 = vector.extract_strided_slice %5 {offsets = [0, 1, 0], sizes = [2, 1, 128], strides = [1, 1, 1]} : vector<2x4x128xf32> to vector<2x1x128xf32>
    %15 = vector.extract_strided_slice %7 {offsets = [0, 1], sizes = [64, 1], strides = [1, 1]} : vector<64x4xf32> to vector<64x1xf32>
    %16 = vector.shape_cast %15 : vector<64x1xf32> to vector<1x64x1xf32>
    %17 = vector.broadcast %14 : vector<2x1x128xf32> to vector<2x64x128xf32>
    %18 = vector.broadcast %16 : vector<1x64x1xf32> to vector<2x64x128xf32>
    %19 = arith.mulf %17, %18 : vector<2x64x128xf32>
    %20 = arith.addf %13, %19 : vector<2x64x128xf32>
    %21 = vector.extract_strided_slice %5 {offsets = [0, 2, 0], sizes = [2, 1, 128], strides = [1, 1, 1]} : vector<2x4x128xf32> to vector<2x1x128xf32>
    %22 = vector.extract_strided_slice %7 {offsets = [0, 2], sizes = [64, 1], strides = [1, 1]} : vector<64x4xf32> to vector<64x1xf32>
    %23 = vector.shape_cast %22 : vector<64x1xf32> to vector<1x64x1xf32>
    %24 = vector.broadcast %21 : vector<2x1x128xf32> to vector<2x64x128xf32>
    %25 = vector.broadcast %23 : vector<1x64x1xf32> to vector<2x64x128xf32>
    %26 = arith.mulf %24, %25 : vector<2x64x128xf32>
    %27 = arith.addf %20, %26 : vector<2x64x128xf32>
    %28 = vector.extract_strided_slice %5 {offsets = [0, 3, 0], sizes = [2, 1, 128], strides = [1, 1, 1]} : vector<2x4x128xf32> to vector<2x1x128xf32>
    %29 = vector.extract_strided_slice %7 {offsets = [0, 3], sizes = [64, 1], strides = [1, 1]} : vector<64x4xf32> to vector<64x1xf32>
    %30 = vector.shape_cast %29 : vector<64x1xf32> to vector<1x64x1xf32>
    %31 = vector.broadcast %28 : vector<2x1x128xf32> to vector<2x64x128xf32>
    %32 = vector.broadcast %30 : vector<1x64x1xf32> to vector<2x64x128xf32>
    %33 = arith.mulf %31, %32 : vector<2x64x128xf32>
    %34 = arith.addf %27, %33 : vector<2x64x128xf32>
    %c0_7 = arith.constant 0 : index
    %c0_8 = arith.constant 0 : index
    %c0_9 = arith.constant 0 : index
    %35 = vector.load %arg4[%c0_7, %c0_8, %c0_9] : memref<1x64x1xf32, #tpu.memory_space<vmem>>, vector<1x64x1xf32>
    %36 = vector.shape_cast %35 : vector<1x64x1xf32> to vector<64x1xf32>
    %37 = vector.shape_cast %36 : vector<64x1xf32> to vector<1x64x1xf32>
    %38 = vector.broadcast %37 : vector<1x64x1xf32> to vector<2x64x128xf32>
    %39 = arith.addf %34, %38 : vector<2x64x128xf32>
    %cst = arith.constant 0.000000e+00 : f32
    %40 = vector.broadcast %cst : f32 to vector<2x64x128xf32>
    %41 = arith.maximumf %39, %40 : vector<2x64x128xf32>
    %c0_10 = arith.constant 0 : index
    %c0_11 = arith.constant 0 : index
    %42 = vector.load %arg12[%c0_10, %c0_11] : memref<2x64xf32, #tpu.memory_space<vmem>>, vector<2x64xf32>
    %cst_12 = arith.constant dense<0.000000e+00> : vector<2x64xf32>
    %43 = vector.multi_reduction <add>, %41, %cst_12 [2] : vector<2x64x128xf32> to vector<2x64xf32>
    %44 = arith.addf %42, %43 : vector<2x64xf32>
    %c0_13 = arith.constant 0 : index
    %c0_14 = arith.constant 0 : index
    %45 = vector.load %arg12[%c0_13, %c0_14] : memref<2x64xf32, #tpu.memory_space<vmem>>, vector<2x64xf32>
    tpu.vector_store %arg12[%c0_13, %c0_14], %44 {strides = array<i32>} : memref<2x64xf32, #tpu.memory_space<vmem>>, vector<2x64xf32>,
    %c1_i32 = arith.constant 1 : i32
    %46 = arith.cmpi eq, %arg1, %c1_i32 : i32
    %47 = arith.extui %46 : i1 to i32
    %c0_i32_15 = arith.constant 0 : i32
    %48 = arith.cmpi ne, %47, %c0_i32_15 : i32
    scf.if %48 {
      %c0_16 = arith.constant 0 : index
      %c0_17 = arith.constant 0 : index
      %49 = vector.load %arg12[%c0_16, %c0_17] : memref<2x64xf32, #tpu.memory_space<vmem>>, vector<2x64xf32>
      %cst_18 = arith.constant 3.906250e-03 : f32
      %50 = vector.broadcast %cst_18 : f32 to vector<2x64xf32>
      %51 = arith.mulf %49, %50 : vector<2x64xf32>
      %52 = arith.truncf %51 : vector<2x64xf32> to vector<2x64xbf16>
      %c0_19 = arith.constant 0 : index
      %c0_20 = arith.constant 0 : index
      %c0_21 = arith.constant 0 : index
      %53 = vector.load %arg5[%c0_19, %c0_20, %c0_21] : memref<1x64x512xbf16, #tpu.memory_space<vmem>>, vector<1x64x512xbf16>
      %54 = vector.shape_cast %53 : vector<1x64x512xbf16> to vector<64x512xbf16>
      %cst_22 = arith.constant dense<0.000000e+00> : vector<2x512xf32>
      %55 = tpu.matmul %52, %54, %cst_22 {dimension_numbers = #tpu.dot_dimension_numbers<[1], [0], [0], [1], [0, 0, 1, 1], [], []>} : vector<2x64xbf16>, vector<64x512xbf16>, vector<2x512xf32> -> vector<2x512xf32>
      %c0_23 = arith.constant 0 : index
      %c0_24 = arith.constant 0 : index
      %c0_25 = arith.constant 0 : index
      %56 = vector.load %arg6[%c0_23, %c0_24, %c0_25] : memref<1x1x512xf32, #tpu.memory_space<vmem>>, vector<1x1x512xf32>
      %57 = vector.shape_cast %56 : vector<1x1x512xf32> to vector<1x512xf32>
      %58 = vector.broadcast %57 : vector<1x512xf32> to vector<2x512xf32>
      %59 = arith.addf %55, %58 : vector<2x512xf32>
      %cst_26 = arith.constant dense<0.000000e+00> : vector<2xf32>
      %60 = vector.multi_reduction <add>, %59, %cst_26 [1] : vector<2x512xf32> to vector<2xf32>
      %61 = vector.shape_cast %60 : vector<2xf32> to vector<2x1xf32>
      %cst_27 = arith.constant 5.120000e+02 : f32
      %62 = vector.broadcast %cst_27 : f32 to vector<2x1xf32>
      %63 = arith.divf %61, %62 : vector<2x1xf32>
      %64 = vector.broadcast %63 : vector<2x1xf32> to vector<2x512xf32>
      %65 = arith.subf %59, %64 : vector<2x512xf32>
      %66 = arith.mulf %65, %65 : vector<2x512xf32>
      %cst_28 = arith.constant dense<0.000000e+00> : vector<2xf32>
      %67 = vector.multi_reduction <add>, %66, %cst_28 [1] : vector<2x512xf32> to vector<2xf32>
      %68 = vector.shape_cast %67 : vector<2xf32> to vector<2x1xf32>
      %cst_29 = arith.constant 5.120000e+02 : f32
      %69 = vector.broadcast %cst_29 : f32 to vector<2x1xf32>
      %70 = arith.divf %68, %69 : vector<2x1xf32>
      %cst_30 = arith.constant 9.99999974E-6 : f32
      %71 = vector.broadcast %cst_30 : f32 to vector<2x1xf32>
      %72 = arith.addf %70, %71 : vector<2x1xf32>
      %73 = math.rsqrt %72 : vector<2x1xf32>
      %74 = vector.broadcast %73 : vector<2x1xf32> to vector<2x512xf32>
      %75 = arith.mulf %65, %74 : vector<2x512xf32>
      %c0_31 = arith.constant 0 : index
      %c0_32 = arith.constant 0 : index
      %c0_33 = arith.constant 0 : index
      %76 = vector.load %arg7[%c0_31, %c0_32, %c0_33] : memref<1x1x512xf32, #tpu.memory_space<vmem>>, vector<1x1x512xf32>
      %77 = vector.shape_cast %76 : vector<1x1x512xf32> to vector<1x512xf32>
      %78 = vector.broadcast %77 : vector<1x512xf32> to vector<2x512xf32>
      %79 = arith.mulf %75, %78 : vector<2x512xf32>
      %c0_34 = arith.constant 0 : index
      %c0_35 = arith.constant 0 : index
      %c0_36 = arith.constant 0 : index
      %80 = vector.load %arg8[%c0_34, %c0_35, %c0_36] : memref<1x1x512xf32, #tpu.memory_space<vmem>>, vector<1x1x512xf32>
      %81 = vector.shape_cast %80 : vector<1x1x512xf32> to vector<1x512xf32>
      %82 = vector.broadcast %81 : vector<1x512xf32> to vector<2x512xf32>
      %83 = arith.addf %79, %82 : vector<2x512xf32>
      %84 = arith.truncf %83 : vector<2x512xf32> to vector<2x512xbf16>
      %c0_37 = arith.constant 0 : index
      %c0_38 = arith.constant 0 : index
      %c0_39 = arith.constant 0 : index
      %85 = vector.load %arg9[%c0_37, %c0_38, %c0_39] : memref<1x512x512xbf16, #tpu.memory_space<vmem>>, vector<1x512x512xbf16>
      %86 = vector.shape_cast %85 : vector<1x512x512xbf16> to vector<512x512xbf16>
      %cst_40 = arith.constant dense<0.000000e+00> : vector<2x512xf32>
      %87 = tpu.matmul %84, %86, %cst_40 {dimension_numbers = #tpu.dot_dimension_numbers<[1], [0], [0], [1], [0, 0, 1, 1], [], []>} : vector<2x512xbf16>, vector<512x512xbf16>, vector<2x512xf32> -> vector<2x512xf32>
      %c0_41 = arith.constant 0 : index
      %c0_42 = arith.constant 0 : index
      %c0_43 = arith.constant 0 : index
      %88 = vector.load %arg10[%c0_41, %c0_42, %c0_43] : memref<1x1x512xf32, #tpu.memory_space<vmem>>, vector<1x1x512xf32>
      %89 = vector.shape_cast %88 : vector<1x1x512xf32> to vector<1x512xf32>
      %90 = vector.broadcast %89 : vector<1x512xf32> to vector<2x512xf32>
      %91 = arith.addf %87, %90 : vector<2x512xf32>
      %c0_44 = arith.constant 0 : index
      %c0_45 = arith.constant 0 : index
      %c0_46 = arith.constant 0 : index
      %92 = vector.load %arg11[%c0_44, %c0_45, %c0_46] : memref<1x2x512xf32, #tpu.memory_space<vmem>>, vector<1x2x512xf32>
      %93 = vector.shape_cast %92 : vector<1x2x512xf32> to vector<2x512xf32>
      %94 = vector.shape_cast %91 : vector<2x512xf32> to vector<1x2x512xf32>
      tpu.vector_store %arg11[%c0_44, %c0_45, %c0_46], %94 {strides = array<i32>} : memref<1x2x512xf32, #tpu.memory_space<vmem>>, vector<1x2x512xf32>,
    } else {
    }
    return
  }
  func.func @transform_0(%arg0: i32, %arg1: i32) -> (i32, i32, i32, i32) {
    %c0_i32 = arith.constant 0 : i32
    %c0_i32_0 = arith.constant 0 : i32
    %c0_i32_1 = arith.constant 0 : i32
    return %arg0, %c0_i32, %c0_i32_0, %arg1 : i32, i32, i32, i32
  }
  func.func @transform_1(%arg0: i32, %arg1: i32) -> (i32, i32, i32) {
    %c0_i32 = arith.constant 0 : i32
    %c0_i32_0 = arith.constant 0 : i32
    %c0_i32_1 = arith.constant 0 : i32
    return %arg0, %c0_i32, %c0_i32_0 : i32, i32, i32
  }
  func.func @transform_2(%arg0: i32, %arg1: i32) -> (i32, i32, i32) {
    %c0_i32 = arith.constant 0 : i32
    %c0_i32_0 = arith.constant 0 : i32
    %c0_i32_1 = arith.constant 0 : i32
    return %arg0, %c0_i32, %c0_i32_0 : i32, i32, i32
  }
  func.func @transform_3(%arg0: i32, %arg1: i32) -> (i32, i32, i32) {
    %c0_i32 = arith.constant 0 : i32
    %c0_i32_0 = arith.constant 0 : i32
    %c0_i32_1 = arith.constant 0 : i32
    return %arg0, %c0_i32, %c0_i32_0 : i32, i32, i32
  }
  func.func @transform_4(%arg0: i32, %arg1: i32) -> (i32, i32, i32) {
    %c0_i32 = arith.constant 0 : i32
    %c0_i32_0 = arith.constant 0 : i32
    %c0_i32_1 = arith.constant 0 : i32
    return %arg0, %c0_i32, %c0_i32_0 : i32, i32, i32
  }
  func.func @transform_5(%arg0: i32, %arg1: i32) -> (i32, i32, i32) {
    %c0_i32 = arith.constant 0 : i32
    %c0_i32_0 = arith.constant 0 : i32
    %c0_i32_1 = arith.constant 0 : i32
    return %arg0, %c0_i32, %c0_i32_0 : i32, i32, i32
  }
  func.func @transform_6(%arg0: i32, %arg1: i32) -> (i32, i32, i32) {
    %c0_i32 = arith.constant 0 : i32
    %c0_i32_0 = arith.constant 0 : i32
    %c0_i32_1 = arith.constant 0 : i32
    return %arg0, %c0_i32, %c0_i32_0 : i32, i32, i32
  }
  func.func @transform_7(%arg0: i32, %arg1: i32) -> (i32, i32, i32) {
    %c0_i32 = arith.constant 0 : i32
    %c0_i32_0 = arith.constant 0 : i32
    %c0_i32_1 = arith.constant 0 : i32
    return %arg0, %c0_i32, %c0_i32_0 : i32, i32, i32
  }
  func.func @transform_8(%arg0: i32, %arg1: i32) -> (i32, i32, i32) {
    %c0_i32 = arith.constant 0 : i32
    %c0_i32_0 = arith.constant 0 : i32
    %c0_i32_1 = arith.constant 0 : i32
    return %arg0, %c0_i32, %c0_i32_0 : i32, i32, i32
  }
  func.func @transform_9(%arg0: i32, %arg1: i32) -> (i32, i32, i32) {
    %c0_i32 = arith.constant 0 : i32
    %c0_i32_0 = arith.constant 0 : i32
    %c0_i32_1 = arith.constant 0 : i32
    return %arg0, %c0_i32, %c0_i32_0 : i32, i32, i32
  }
}

</mosaic_0001>

<bundles_post_ra>
// kernel: six_vision_encoder.1
= control target key start
LH: loop header
LB: loop body
LE: loop exit
PB: predicated region body
PF: predicated region fallthrough
CT: control target
= control target key end

     0   :  { %s3852_s0 = inlined_call_operand.vmem [shape: bf16[6,2,4,256], index: 0, kind: input, shape index: {}]   ;;  %s3853_s1 = inlined_call_operand.vmem [shape: f32[6,64,4], index: 1, kind: input, shape index: {}]   ;;  %s3854_s2 = inlined_call_operand.vmem [shape: f32[6,64,1], index: 2, kind: input, shape index: {}]   ;;  %s3855_s3 = inlined_call_operand.vmem [shape: bf16[6,64,512], index: 3, kind: input, shape index: {}]   ;;  %s3856_s4 = inlined_call_operand.vmem [shape: f32[6,1,512], index: 4, kind: input, shape index: {}]   ;;  %s3857_s5 = inlined_call_operand.vmem [shape: f32[6,1,512], index: 5, kind: input, shape index: {}]   ;;  %s3858_s6 = inlined_call_operand.vmem [shape: f32[6,1,512], index: 6, kind: input, shape index: {}]   ;;  %s3859_s7 = inlined_call_operand.vmem [shape: bf16[6,512,512], index: 7, kind: input, shape index: {}]   ;;  %s3860_s8 = inlined_call_operand.vmem [shape: f32[6,1,512], index: 8, kind: input, shape index: {}]   ;;  %s3861_s9 = inlined_call_operand.hbm [shape: f32[6,2,512], index: 9, kind: output, shape index: {}]  }
   0x1   :  { %3874 = sst [smem:[#allocation18_spill]] %s3852_s0 }
   0x2   :  { %3875 = sst [smem:[#allocation19_spill]] %s3853_s1 }
   0x3   :  { %3876 = sst [smem:[#allocation20_spill]] %s3854_s2 }
   0x4   :  { %3877 = sst [smem:[#allocation21_spill]] %s3855_s3 }
   0x5   :  { %3878 = sst [smem:[#allocation22_spill]] %s3861_s9 }
   0x6   :  { %14 = vsyncpa [#allocation5], 0 }
   0x7   :  { %16 = vsyncpa [#allocation5 + $0x1], 0  ;;  %s3208_s30 = smov 0   ;;  %s3210_s10 = smov 0  }
   0x8   :  { %s3212_s11 = smov 0   ;;  %s3214_s12 = smov 0  }
   0x9   :  { %s3216_s13 = smov 0   ;;  %s3218_s14 = smov 0  }
   0xa   :  { %s3220_s15 = smov 0   ;;  %s3222_s16 = smov 0  }
   0xb   :  { %s3224_s17 = smov 0   ;;  %s3226_s18 = smov 0  }
   0xc LB: > { %3879 = sst [smem:[#allocation7_spill]] %s3112_s30  ;;  %s2531_s19 = sadd.s32 4294967295, %s3148_s18   ;;  %s3148_s18 = sphi %s3226_s18, %s22_s18   ;;  %s3144_s17 = sphi %s3224_s17, %s3910_s17   ;;  %s3140_s16 = sphi %s3222_s16, %s3909_s16   ;;  %s3136_s15 = sphi %s3220_s15, %s3908_s15   ;;  %s3132_s14 = sphi %s3218_s14, %s3907_s14   ;;  %s3128_s13 = sphi %s3216_s13, %s3906_s13   ;;  %s3124_s12 = sphi %s3214_s12, %s3905_s12   ;;  %s3120_s11 = sphi %s3212_s11, %s3904_s11   ;;  %s3116_s10 = sphi %s3210_s10, %s3912_s10   ;;  %s3112_s30 = sphi %s3208_s30, %s3911_s30  }
   0xd   : > { %3880 = sst [smem:[#allocation8_spill]] %s3120_s11  ;;  %s2532_s20 = sadd.s32 4294967294, %s3148_s18  }
   0xe   : > { %3881 = sst [smem:[#allocation9_spill]] %s3128_s13  ;;  %s31_s21 = sadd.s32 1, %s3140_s16 }
   0xf   : > { %3882 = sst [smem:[#allocation10_spill]] %s3140_s16  ;;  %s34_s22 = sadd.s32 1, %s3144_s17 }
  0x10   : > { %3883 = sst [smem:[#allocation11_spill]] %s3144_s17  ;;  %p32_p0 = scmp.ge.s32.totalorder %s31_s21, 2 }
  0x11   : > { %3884 = sst [smem:[#allocation12_spill]] %s3148_s18  ;;  %s43_s23 = sadd.s32 1, %s3128_s13 }
  0x12   : > { %p50_p1 = scmp.ne.s32.totalorder %s3128_s13, %s3124_s12  ;;  %p51_p2 = scmp.eq.s32.totalorder %s3148_s18, 0 }
  0x13   : > { %s3914_s21 = smov (%p32_p0, %s31_s21), 0  ;;  %s3916_s22 = smov (!%p32_p0, %s34_s22), %s3144_s17 }
  0x14   : > { %3885 = sst [smem:[#allocation13_spill]] %s3914_s21  ;;  %s39_s24 = ssub.s32 %s3140_s16, %s3914_s21 }
  0x15   : > { %p3271_p3 = por %p51_p2, %p50_p1  ;;  %p36_p4 = scmp.ge.s32.totalorder %s3916_s22, 6 }
  0x16   : > { %s277_s26 = sadd.s32 1, %s3120_s11  ;;  %p287_p5 = scmp.ne.s32.totalorder %s3120_s11, %s3116_s10 }
  0x17   : > { %p288_p6 = scmp.eq.s32.totalorder %s2531_s19, 11  ;;  %s3918_s22 = smov (%p36_p4, %s3916_s22), 0 }
  0x18   : > { %3887 = sst [smem:[#allocation14_spill]] %s3918_s22  ;;  %p293_p8 = scmp.ne.s32.totalorder %s3116_s10, %s3112_s30 }
  0x19   : > { %p3280_p7 = por %p288_p6, %p287_p5  ;;  %s38_s28 = ssub.s32 %s3144_s17, %s3918_s22 }
  0x1a   : > { %p294_p9 = scmp.eq.s32.totalorder %s2532_s20, 11  ;;  %s40_s29 = sor.u32 %s39_s24, %s38_s28 }
  0x1b   : > { %p275_p10 = scmp.eq.s32.totalorder %s38_s28, 0  ;;  %p41_p11 = scmp.eq.s32.totalorder %s40_s29, 0 }
  0x1c   : > { %p3288_p12 = por %p294_p9, %p293_p8  ;;  %p2534_p13 = scmp.ge.s32.totalorder %s3148_s18, 12 }
  0x1d   : > { %s3293_s9 = scalar_select %p275_p10, %s3120_s11, %s277_s26  }
  0x1e   : > { %s3889_s21 = scalar_select %p3288_p12, 1, 0 }
  0x1f   : > { %3891 = sst [smem:[#allocation16_spill]] %s3293_s9  ;;  %310 = sbr.rel (%p2534_p13) target bundleno = 47 (0x2f), region = 16 }
  0x20   : > { %3890 = sst [smem:[#allocation15_spill]] %s3889_s21 }
  0x21   : > { %s3296_s19 = scalar_select %p41_p11, %s3128_s13, %s43_s23  }
  0x23   : > { %3892 = sst [smem:[#allocation17_spill]] %s3296_s19 }
  0x24   : > { %313 = sbr.rel (!%p3271_p3) target bundleno = 47 (0x2f), region = 20  ;;  %s315_s20 = sand.u32 (%p3271_p3), 1, %s3128_s13  }
  0x25   : > { %s2536_s24 = sshll.u32 (%p3271_p3), %s3144_s17, 2  ;;  %s2535_s28 = sshll.u32 (%p3271_p3), %s315_s20, 2 }
  0x26   : > { %s319_s29 = sadd.s32 (%p3271_p3), %s3140_s16, %s2536_s24  ;;  %s3893_s0 = sld [smem:[#allocation18_spill]] (%p3271_p3) }
  0x27   : > { %s2537_s22 = sshll.u32 (%p3271_p3), %s319_s29, 1  ;;  %s317_s23 = scalar_lea.vmem (%p3271_p3), [#allocation3], %s2535_s28 }
  0x2c   : > { %s321_s26 = scalar_lea.vmem %s3893_s0, %s2537_s22 }
  0x2d   : > { %v338_v0 = vld [vmem:[%s321_s26] sm:$0x3]  ;;  %v340_v1 = vld [vmem:[%s321_s26 + $0x4] sm:$0x3] }
  0x2e   : > { %339 = vst [vmem:[%s317_s23] sm:$0x3] %v338_v0  ;;  %341 = vst [vmem:[%s317_s23 + $0x2] sm:$0x3] %v340_v1 }
  0x2f PF: > { %p2538_p0 = scmp.ge.s32.totalorder %s3148_s18, 1  ;;  %p420_p1 = scmp.lt.s32.totalorder %s3148_s18, 13 }
  0x31   : > { %p421_p2 = pnand %p2538_p0, %p420_p1 }
  0x32   : > { %s427_s30 = sand.u32 (!%p421_p2), 1, %s3124_s12   ;;  %s3869_s21 = sand.u32 (!%p421_p2), 1, %s3116_s10  }
  0x33   : > { %424 = sbr.rel (%p421_p2) target bundleno = 1288 (0x508), region = 86  ;;  %s3311_s22 = sshll.u32 (!%p421_p2), %s427_s30, 2 }
  0x34   : > { %s3315_s25 = sshll.u32 (!%p421_p2), %s3869_s21, 3  ;;  %p498_p3 = scmp.lt.s32.totalorder (!%p421_p2), %s3136_s15, 5 }
  0x35   : > { %s3894_s1 = sld [smem:[#allocation19_spill]] (!%p421_p2)  ;;  %s429_s18 = scalar_lea.vmem (!%p421_p2), [#allocation3], %s3311_s22 }
  0x36   : > { %s3895_s2 = sld [smem:[#allocation20_spill]] (!%p421_p2)  ;;  %s497_s29 = scalar_lea.vmem (!%p421_p2), [#allocation4], %s3315_s25 }
  0x37   : > { %s3896_s3 = sld [smem:[#allocation21_spill]] (!%p421_p2)  ;;  %p2553_p4 = scmp.ne.s32.totalorder (!%p421_p2), %s3132_s14, 0 }
  0x38   : > { %s499_s20 = scalar_select %p498_p3, %s3136_s15, 5 }
  0x3a   : > { %s2706_s24 = sshll.u32 %s499_s20, 6  ;;  %s2708_s28 = sshll.u32 %s499_s20, 7 }
  0x3b   : > { %s3322_s23 = scalar_lea.vmem %s3894_s1, %s2706_s24  ;;  %s3334_s19 = sshll.u32 %s499_s20, 2 }
  0x3c   : > { %s3327_s12 = scalar_lea.vmem %s3895_s2, %s2706_s24  ;;  %s520_s0 = scalar_lea.vmem %s3857_s5, %s3334_s19 }
  0x3d   : > { %s3332_s21 = scalar_lea.vmem %s3896_s3, %s2708_s28  ;;  %s524_s16 = scalar_lea.vmem %s3858_s6, %s3334_s19 }
  0x3e   : > { %s2709_s28 = sshll.u32 %s499_s20, 10  ;;  %s533_s13 = scalar_lea.vmem %s3860_s8, %s3334_s19 }
  0x3f   : > { %s3351_s3 = scalar_lea.vmem %s3859_s7, %s2709_s28  ;;  %538 = sbr.rel (%p2553_p4) target bundleno = 70 (0x46), region = 94 }
  0x44   : > { %vm539_vm0 = vcmask 517120   ;;  %v3150_v2 = vmov 0.0  }
  0x45   : > { %540 = vst.msk [vmem:[#allocation2] sm:$0x3] %vm539_vm0, %v3150_v2 }
  0x46 PF: > { %v547_v3 = vld [vmem:[%s3322_s23 + $0x10] sm:$0xff]  ;;  %v545_v4 = vld [vmem:[%s3322_s23] sm:$0xff]  ;;  %v3151_v5 = vmov 1   ;;  %v3152_v6 = vmov 0   ;;  %v548_v7 = vld [vmem:[%s3322_s23 + $0x18] sm:$0xff]  ;;  %v3153_v10 = vmov 2   ;;  %v553_v23 = vlaneseq }
  0x47   : > { %2806 = vset.pattern.permute.xlu0 %v3151_v5  ;;  %2805 = vset.pattern.permute.xlu1 %v3152_v6  ;;  %v550_v8 = vld [vmem:[%s3322_s23 + $0x28] sm:$0xff]  ;;  %v552_v9 = vld [vmem:[%s3322_s23 + $0x38] sm:$0xff]  ;;  %v3154_v12 = vmov 3   ;;  %v549_v13 = vld [vmem:[%s3322_s23 + $0x20] sm:$0xff]  ;;  %vm973_vm1 = vcmask 130112   ;;  %vm980_vm2 = vcmask 195712  }
  0x48   : > { %573 = vperm.xlu1 %2805, %v547_v3   ;;  %626 = vperm.xlu0 %2806, %v545_v4   ;;  %v546_v11 = vld [vmem:[%s3322_s23 + $0x8] sm:$0xff]  ;;  %v551_v14 = vld [vmem:[%s3322_s23 + $0x30] sm:$0xff]  ;;  %v833_v15 = vld [vmem:[%s3327_s12] sm:$0xff]  ;;  %v3381_v24 = vshrl.u32 %v553_v23, 7  ;;  %vm987_vm3 = vcmask 261312   ;;  %vm994_vm4 = vcmask 326912  }
  0x49   : > { %v835_v16 = vld [vmem:[%s3327_s12 + $0x10] sm:$0xff]  ;;  %v836_v17 = vld [vmem:[%s3327_s12 + $0x18] sm:$0xff]  ;;  %v838_v18 = vld [vmem:[%s3327_s12 + $0x28] sm:$0xff]  ;;  %vm1001_vm5 = vcmask 392512   ;;  %vm1008_vm6 = vcmask 458112   ;;  %vm1015_vm7 = vcmask 523712  }
  0x4a   : > { %v840_v19 = vld [vmem:[%s3327_s12 + $0x38] sm:$0xff]  ;;  %v834_v20 = vld [vmem:[%s3327_s12 + $0x8] sm:$0xff]  ;;  %v837_v21 = vld [vmem:[%s3327_s12 + $0x20] sm:$0xff]  ;;  %v3388_v27 = vsub.s32 1, %v3381_v24  ;;  %v3391_v28 = vsub.s32 0, %v3381_v24  ;;  %v3424_v51 = vsub.s32 2, %v3381_v24 }
  0x4b   : > { %v839_v22 = vld [vmem:[%s3327_s12 + $0x30] sm:$0xff]  ;;  %v541_v25 = vld [vmem:[%s429_s18] sm:$0x3]  ;;  %v542_v26 = vld [vmem:[%s429_s18 + $0x2] sm:$0x3]  ;;  %vm1056_vm8 = vcmask 1041409  }
  0x4c   : > { %578 = vperm.xlu1 %2805, %v548_v7   ;;  %638 = vperm.xlu0 %2806, %v548_v7   ;;  %v543_v29 = vunpack.c.l.bf16 %v541_v25  ;;  %v3393_v30 = vunpack.c.l.bf16 %v542_v26  ;;  %vm1060_vm9 = vcmask 517120   ;;  %p2554_p5 = scmp.ne.s32.totalorder %s3132_s14, 1 }
  0x4d   : > { %s3897_s11 = scalar_lea.vmem (!%p2554_p5), %s3856_s4, %s3334_s19 }
  0x4e   : > { %v3398_v33 = vrot.slane %v543_v29, %v3388_v27  ;;  %v3402_v34 = vrot.slane %v3393_v30, %v3388_v27  ;;  %v3405_v35 = vrot.slane %v543_v29, %v3391_v28  ;;  %v3409_v36 = vrot.slane %v3393_v30, %v3391_v28 }
  0x4f   : > { %v3429_v56 = vrot.slane %v543_v29, %v3424_v51  ;;  %v3433_v57 = vrot.slane %v3393_v30, %v3424_v51 }
  0x50   : > { %588 = vperm.xlu1 %2805, %v550_v8   ;;  %646 = vperm.xlu0 %2806, %v550_v8  }
  0x54   : > { %598 = vperm.xlu1 %2805, %v552_v9   ;;  %2809 = vset.pattern.permute.xlu0 %v3153_v10 }
  0x55   : > { %698 = vperm.xlu0 %2809, %v545_v4  }
  0x58   : > { %2807 = vset.pattern.permute.xlu1 %v3151_v5 }
  0x59   : > { %630 = vperm.xlu1 %2807, %v546_v11   ;;  %718 = vperm.xlu0 %2809, %v550_v8  }
  0x5d   : > { %634 = vperm.xlu1 %2807, %v547_v3   ;;  %2814 = vset.pattern.permute.xlu0 %v3154_v12 }
  0x5e   : > { %774 = vperm.xlu0 %2814, %v546_v11  }
  0x61   : > { %642 = vperm.xlu1 %2807, %v549_v13  }
  0x62   : > { %778 = vperm.xlu0 %2814, %v547_v3  }
  0x65   : > { %2808 = vset.pattern.permute.xlu1 %v3153_v10 }
  0x66   : > { %702 = vperm.xlu1 %2808, %v546_v11   ;;  %786 = vperm.xlu0 %2814, %v549_v13  }
  0x6a   : > { %706 = vperm.xlu1 %2808, %v547_v3   ;;  %2817 = vset.pattern.permute.xlu0 %v3152_v6 }
  0x6b   : > { %563 = vperm.xlu0 %2817, %v545_v4  }
  0x6e   : > { %710 = vperm.xlu1 %2808, %v548_v7  }
  0x6f   : > { %568 = vperm.xlu0 %2817, %v546_v11  }
  0x72   : > { %2810 = vset.pattern.permute.xlu1 %v3154_v12 }
  0x73   : > { %770 = vperm.xlu1 %2810, %v545_v4   ;;  %583 = vperm.xlu0 %2817, %v549_v13  }
  0x77   : > { %2811 = vset.pattern.permute.xlu1 %v3151_v5  ;;  %593 = vperm.xlu0 %2817, %v551_v14  }
  0x78   : > { %650 = vperm.xlu1 %2811, %v551_v14  }
  0x7b   : > { %843 = vperm.xlu0 %2817, %v833_v15  }
  0x7c   : > { %2812 = vset.pattern.permute.xlu1 %v3153_v10 }
  0x7d   : > { %714 = vperm.xlu1 %2812, %v549_v13  }
  0x7f   : > { %853 = vperm.xlu0 %2817, %v835_v16  }
  0x81   : > { %2813 = vset.pattern.permute.xlu1 %v3151_v5 }
  0x82   : > { %654 = vperm.xlu1 %2813, %v552_v9  }
  0x83   : > { %858 = vperm.xlu0 %2817, %v836_v17  }
  0x86   : > { %2815 = vset.pattern.permute.xlu1 %v3154_v12 }
  0x87   : > { %782 = vperm.xlu1 %2815, %v548_v7   ;;  %868 = vperm.xlu0 %2817, %v838_v18  }
  0x8b   : > { %2816 = vset.pattern.permute.xlu1 %v3153_v10  ;;  %878 = vperm.xlu0 %2817, %v840_v19  }
  0x8c   : > { %722 = vperm.xlu1 %2816, %v551_v14  }
  0x90   : > { %726 = vperm.xlu1 %2816, %v552_v9  }
  0x94   : > { %2818 = vset.pattern.permute.xlu1 %v3154_v12 }
  0x95   : > { %790 = vperm.xlu1 %2818, %v550_v8  }
  0x99   : > { %2819 = vset.pattern.permute.xlu1 %v3152_v6 }
  0x9a   : > { %848 = vperm.xlu1 %2819, %v834_v20  }
  0x9e   : > { %2820 = vset.pattern.permute.xlu1 %v3154_v12 }
  0x9f   : > { %794 = vperm.xlu1 %2820, %v551_v14   ;;  %v3451_v14 = vsub.s32 3, %v3381_v24 }
  0xa3   : > { %798 = vperm.xlu1 %2820, %v552_v9  }
  0xa7   : > { %2821 = vset.pattern.permute.xlu1 %v3152_v6 }
  0xa8   : > { %863 = vperm.xlu1 %2821, %v837_v21   ;;  %v3457_v21 = vrot.slane %v543_v29, %v3451_v14 }
  0xac   : > { %873 = vperm.xlu1 %2821, %v839_v22  }
  0xc3   : > { %v3395_v31 = vpop.permute.xlu1 %573  ;;  %v627_v32 = vpop.permute.xlu0 %626 }
  0xc4   : > { %v665_v8 = vmul.f32 %v627_v32, %v3402_v34  ;;  %v657_v17 = vmul.f32 %v627_v32, %v3398_v33 }
  0xc7   : > { %v579_v37 = vpop.permute.xlu1 %578  ;;  %v639_v38 = vpop.permute.xlu0 %638 }
  0xc8   : > { %v604_v39 = vmul.f32 %v579_v37, %v3405_v35  ;;  %v612_v40 = vmul.f32 %v579_v37, %v3409_v36  ;;  %v660_v41 = vmul.f32 %v639_v38, %v3398_v33  ;;  %v668_v42 = vmul.f32 %v639_v38, %v3402_v34 }
  0xca   : > { %v3415_v43 = vadd.f32 %v660_v41, %v604_v39  ;;  %v3417_v44 = vadd.f32 %v668_v42, %v612_v40 }
  0xcb   : > { %v589_v45 = vpop.permute.xlu1 %588  ;;  %v647_v46 = vpop.permute.xlu0 %646 }
  0xcc   : > { %v606_v47 = vmul.f32 %v589_v45, %v3405_v35  ;;  %v614_v48 = vmul.f32 %v589_v45, %v3409_v36  ;;  %v662_v49 = vmul.f32 %v647_v46, %v3398_v33  ;;  %v670_v50 = vmul.f32 %v647_v46, %v3402_v34 }
  0xce   : > { %v678_v52 = vadd.f32 %v662_v49, %v606_v47  ;;  %v686_v53 = vadd.f32 %v670_v50, %v614_v48 }
  0xcf   : > { %v3426_v54 = vpop.permute.xlu1 %598 }
  0xd0   : > { %v699_v55 = vpop.permute.xlu0 %698 }
  0xd1   : > { %v737_v9 = vmul.f32 %v699_v55, %v3433_v57  ;;  %v729_v20 = vmul.f32 %v699_v55, %v3429_v56 }
  0xd4   : > { %v631_v58 = vpop.permute.xlu1 %630  ;;  %v719_v59 = vpop.permute.xlu0 %718 }
  0xd5   : > { %v734_v60 = vmul.f32 %v719_v59, %v3429_v56  ;;  %v742_v61 = vmul.f32 %v719_v59, %v3433_v57  ;;  %v658_v49 = vmul.f32 %v631_v58, %v3398_v33  ;;  %v666_v50 = vmul.f32 %v631_v58, %v3402_v34 }
  0xd7   : > { %v3437_v62 = vadd.f32 %v734_v60, %v678_v52  ;;  %v3439_v63 = vadd.f32 %v742_v61, %v686_v53  ;;  %v3477_v60 = vrot.slane %v3393_v30, %v3451_v14  ;;  %v611_v61 = vmul.f32 %v3395_v31, %v3409_v36 }
  0xd8   : > { %v635_v0 = vpop.permute.xlu1 %634 }
  0xd9   : > { %v775_v1 = vpop.permute.xlu0 %774  ;;  %v667_v53 = vmul.f32 %v635_v0, %v3402_v34  ;;  %v659_v58 = vmul.f32 %v635_v0, %v3398_v33 }
  0xdc   : > { %v3441_v2 = vpop.permute.xlu1 %642 }
  0xdd   : > { %v3443_v3 = vpop.permute.xlu0 %778 }
  0xe1   : > { %v703_v4 = vpop.permute.xlu1 %702  ;;  %v3445_v5 = vpop.permute.xlu0 %786 }
  0xe5   : > { %v707_v6 = vpop.permute.xlu1 %706 }
  0xe6   : > { %v564_v7 = vpop.permute.xlu0 %563 }
  0xe7   : > { %v609_v10 = vmul.f32 %v564_v7, %v3409_v36  ;;  %v601_v15 = vmul.f32 %v564_v7, %v3405_v35  ;;  %v730_v7 = vmul.f32 %v703_v4, %v3429_v56 }
  0xe9   : > { %v681_v11 = vadd.f32 %v665_v8, %v609_v10  ;;  %v711_v12 = vpop.permute.xlu1 %710  ;;  %v673_v22 = vadd.f32 %v657_v17, %v601_v15  ;;  %v738_v8 = vmul.f32 %v703_v4, %v3433_v57  ;;  %v802_v10 = vmul.f32 %v775_v1, %v3457_v21 }
  0xea   : > { %v569_v13 = vpop.permute.xlu0 %568  ;;  %v811_v4 = vmul.f32 %v3443_v3, %v3477_v60  ;;  %v740_v0 = vmul.f32 %v711_v12, %v3433_v57 }
  0xeb   : > { %v753_v16 = vadd.f32 %v737_v9, %v681_v11  ;;  %v745_v38 = vadd.f32 %v729_v20, %v673_v22  ;;  %v602_v29 = vmul.f32 %v569_v13, %v3405_v35  ;;  %v610_v48 = vmul.f32 %v569_v13, %v3409_v36 }
  0xec   : > { %v739_v9 = vmul.f32 %v707_v6, %v3433_v57  ;;  %v683_v11 = vadd.f32 %v667_v53, %v611_v61  ;;  %v810_v13 = vmul.f32 %v775_v1, %v3477_v60  ;;  %v603_v20 = vmul.f32 %v3395_v31, %v3405_v35 }
  0xed   : > { %v674_v55 = vadd.f32 %v658_v49, %v602_v29  ;;  %v682_v59 = vadd.f32 %v666_v50, %v610_v48  ;;  %v731_v22 = vmul.f32 %v707_v6, %v3429_v56  ;;  %v803_v29 = vmul.f32 %v3443_v3, %v3457_v21 }
  0xee   : > { %v771_v18 = vpop.permute.xlu1 %770  ;;  %v584_v19 = vpop.permute.xlu0 %583  ;;  %v732_v31 = vmul.f32 %v711_v12, %v3429_v56  ;;  %v756_v50 = vadd.f32 %v740_v0, %v3417_v44  ;;  %v661_v12 = vmul.f32 %v3441_v2, %v3398_v33  ;;  %v669_v44 = vmul.f32 %v3441_v2, %v3402_v34 }
  0xef   : > { %v801_v25 = vmul.f32 %v771_v18, %v3457_v21  ;;  %v746_v17 = vadd.f32 %v730_v7, %v674_v55  ;;  %v754_v30 = vadd.f32 %v738_v8, %v682_v59  ;;  %v605_v61 = vmul.f32 %v584_v19, %v3405_v35 }
  0xf0   : > { %v613_v7 = vmul.f32 %v584_v19, %v3409_v36  ;;  %v608_v2 = vmul.f32 %v3426_v54, %v3405_v35 }
  0xf1   : > { %v817_v39 = vadd.f32 %v801_v25, %v745_v38  ;;  %v809_v25 = vmul.f32 %v771_v18, %v3477_v60  ;;  %v755_v38 = vadd.f32 %v739_v9, %v683_v11  ;;  %v818_v1 = vadd.f32 %v802_v10, %v746_v17 }
  0xf2   : > { %v3460_v26 = vpop.permute.xlu0 %593 }
  0xf3   : > { %v3462_v37 = vpop.permute.xlu1 %650  ;;  %v825_v6 = vadd.f32 %v809_v25, %v753_v16  ;;  %v827_v53 = vadd.f32 %v811_v4, %v755_v38  ;;  %v748_v16 = vadd.f32 %v732_v31, %v3415_v43  ;;  %v615_v43 = vmul.f32 %v3460_v26, %v3409_v36 }
  0xf4   : > { %v813_v31 = vmul.f32 %v3445_v5, %v3477_v60 }
  0xf6   : > { %v844_v40 = vpop.permute.xlu0 %843 }
  0xf7   : > { %v881_v41 = vadd.f32 %v844_v40, %v817_v39  ;;  %v675_v39 = vadd.f32 %v659_v58, %v603_v20  ;;  %v889_v8 = vadd.f32 %v844_v40, %v825_v6 }
  0xf8   : > { %v715_v42 = vpop.permute.xlu1 %714 }
  0xf9   : > { %v897_v32 = vmax.f32 %v881_v41, 0.0  ;;  %v747_v48 = vadd.f32 %v731_v22, %v675_v39  ;;  %v741_v17 = vmul.f32 %v715_v42, %v3433_v57  ;;  %v905_v4 = vmax.f32 %v889_v8, 0.0 }
  0xfa   : > { %v854_v49 = vpop.permute.xlu0 %853 }
  0xfb   : > { %914 = vadd.xlane.f32.xlu1 %v897_v32  ;;  %v826_v32 = vadd.f32 %v810_v13, %v754_v30  ;;  %v891_v58 = vadd.f32 %v854_v49, %v827_v53  ;;  %v733_v13 = vmul.f32 %v715_v42, %v3429_v56  ;;  %v819_v19 = vadd.f32 %v803_v29, %v747_v48 }
  0xfc   : > { %v685_v30 = vadd.f32 %v669_v44, %v613_v7  ;;  %v671_v42 = vmul.f32 %v3462_v37, %v3402_v34  ;;  %v616_v29 = vmul.f32 %v3426_v54, %v3409_v36  ;;  %v805_v48 = vmul.f32 %v3445_v5, %v3457_v21 }
  0xfd   : > { %v3464_v45 = vpop.permute.xlu1 %654  ;;  %v883_v25 = vadd.f32 %v854_v49, %v819_v19  ;;  %v907_v38 = vmax.f32 %v891_v58, 0.0  ;;  %v607_v49 = vmul.f32 %v3460_v26, %v3405_v35 }
  0xfe   : > { %v859_v20 = vpop.permute.xlu0 %858  ;;  %v672_v36 = vmul.f32 %v3464_v45, %v3402_v34  ;;  %v664_v26 = vmul.f32 %v3464_v45, %v3398_v33 }
 0x102   : > { %v783_v46 = vpop.permute.xlu1 %782 }
 0x103   : > { %v812_v41 = vmul.f32 %v783_v46, %v3477_v60  ;;  %v804_v9 = vmul.f32 %v783_v46, %v3457_v21  ;;  %v677_v46 = vadd.f32 %v661_v12, %v605_v61 }
 0x105   : > { %v828_v3 = vadd.f32 %v812_v41, %v756_v50  ;;  %v820_v22 = vadd.f32 %v804_v9, %v748_v16  ;;  %v749_v39 = vadd.f32 %v733_v13, %v677_v46  ;;  %v757_v41 = vadd.f32 %v741_v17, %v685_v30 }
 0x106   : > { %v899_v50 = vmax.f32 %v883_v25, 0.0  ;;  %v680_v16 = vadd.f32 %v664_v26, %v608_v2 }
 0x107   : > { %v3466_v47 = vpop.permute.xlu1 %722  ;;  %v892_v0 = vadd.f32 %v859_v20, %v828_v3  ;;  %v884_v6 = vadd.f32 %v859_v20, %v820_v22  ;;  %v821_v61 = vadd.f32 %v805_v48, %v749_v39  ;;  %v829_v35 = vadd.f32 %v813_v31, %v757_v41 }
 0x108   : > { %v743_v54 = vmul.f32 %v3466_v47, %v3433_v57 }
 0x109   : > { %v908_v53 = vmax.f32 %v892_v0, 0.0  ;;  %v900_v34 = vmax.f32 %v884_v6, 0.0 }
 0x10b   : > { %v3472_v52 = vpop.permute.xlu1 %726 }
 0x110   : > { %v791_v15 = vpop.permute.xlu1 %790 }
 0x115   : > { %v849_v18 = vpop.permute.xlu1 %848 }
 0x116   : > { %v882_v55 = vadd.f32 %v849_v18, %v818_v1  ;;  %v890_v59 = vadd.f32 %v849_v18, %v826_v32  ;;  %v814_v1 = vmul.f32 %v791_v15, %v3477_v60  ;;  %v806_v18 = vmul.f32 %v791_v15, %v3457_v21 }
 0x117   : > { %v735_v15 = vmul.f32 %v3466_v47, %v3429_v56 }
 0x118   : > { %v898_v10 = vmax.f32 %v882_v55, 0.0  ;;  %v906_v11 = vmax.f32 %v890_v59, 0.0  ;;  %v663_v55 = vmul.f32 %v3462_v37, %v3398_v33  ;;  %v687_v59 = vadd.f32 %v671_v42, %v615_v43 }
 0x119   : > { %v830_v5 = vadd.f32 %v814_v1, %v3439_v63  ;;  %v744_v37 = vmul.f32 %v3472_v52, %v3433_v57  ;;  %v822_v8 = vadd.f32 %v806_v18, %v3437_v62  ;;  %v736_v33 = vmul.f32 %v3472_v52, %v3429_v56 }
 0x11a   : > { %v795_v40 = vpop.permute.xlu1 %794  ;;  %916 = vadd.xlane.f32.xlu0 %v898_v10  ;;  %932 = vadd.xlane.f32.xlu1 %v906_v11  ;;  %v679_v3 = vadd.f32 %v663_v55, %v607_v49  ;;  %v688_v10 = vadd.f32 %v672_v36, %v616_v29  ;;  %v869_v11 = vpop.permute.xlu0 %868  ;;  %v759_v12 = vadd.f32 %v743_v54, %v687_v59  ;;  %v963_v18 = vand.u32 127, %v553_v23 }
 0x11b   : > { %v815_v9 = vmul.f32 %v795_v40, %v3477_v60  ;;  %v807_v45 = vmul.f32 %v795_v40, %v3457_v21  ;;  %v894_v44 = vadd.f32 %v869_v11, %v830_v5  ;;  %v886_v20 = vadd.f32 %v869_v11, %v822_v8 }
 0x11c   : > { %v751_v62 = vadd.f32 %v735_v15, %v679_v3  ;;  %v760_v13 = vadd.f32 %v744_v37, %v688_v10  ;;  %v752_v22 = vadd.f32 %v736_v33, %v680_v16  ;;  %v975_v55 = vadd.s32 4294967280, %v963_v18 }
 0x11d   : > { %v831_v46 = vadd.f32 %v815_v9, %v759_v12  ;;  %v910_v40 = vmax.f32 %v894_v44, 0.0  ;;  %v982_v36 = vadd.s32 4294967272, %v963_v18  ;;  %v989_v54 = vadd.s32 4294967264, %v963_v18 }
 0x11e   : > { %v799_v32 = vpop.permute.xlu1 %798  ;;  %930 = vadd.xlane.f32.xlu0 %v905_v4  ;;  %934 = vadd.xlane.f32.xlu1 %v907_v38  ;;  %v823_v56 = vadd.f32 %v807_v45, %v751_v62  ;;  %v902_v38 = vmax.f32 %v886_v20, 0.0  ;;  %v879_v0 = vpop.permute.xlu0 %878  ;;  %v996_v26 = vadd.s32 4294967256, %v963_v18  ;;  %v978_v15 = vsub.s32 %v975_v55, %v3381_v24 }
 0x11f   : > { %v816_v47 = vmul.f32 %v799_v32, %v3477_v60  ;;  %v808_v19 = vmul.f32 %v799_v32, %v3457_v21  ;;  %v985_v23 = vsub.s32 %v982_v36, %v3381_v24  ;;  %v992_v9 = vsub.s32 %v989_v54, %v3381_v24 }
 0x120   : > { %v999_v10 = vsub.s32 %v996_v26, %v3381_v24 }
 0x121   : > { %v832_v25 = vadd.f32 %v816_v47, %v760_v13  ;;  %v824_v60 = vadd.f32 %v808_v19, %v752_v22 }
 0x122   : > { %918 = vadd.xlane.f32.xlu0 %v899_v50  ;;  %936 = vadd.xlane.f32.xlu1 %v908_v53  ;;  %v968_v53 = vadd.s32 4294967288, %v963_v18 }
 0x123   : > { %v864_v7 = vpop.permute.xlu1 %863  ;;  %v896_v43 = vadd.f32 %v879_v0, %v832_v25  ;;  %v888_v42 = vadd.f32 %v879_v0, %v824_v60 }
 0x124   : > { %v885_v63 = vadd.f32 %v864_v7, %v821_v61  ;;  %v893_v58 = vadd.f32 %v864_v7, %v829_v35  ;;  %v966_v61 = vsub.s32 %v963_v18, %v3381_v24  ;;  %v971_v35 = vsub.s32 %v968_v53, %v3381_v24 }
 0x125   : > { %v912_v39 = vmax.f32 %v896_v43, 0.0  ;;  %v904_v41 = vmax.f32 %v888_v42, 0.0  ;;  %v1003_v7 = vadd.s32 4294967248, %v963_v18 }
 0x126   : > { %920 = vadd.xlane.f32.xlu0 %v900_v34  ;;  %v909_v57 = vmax.f32 %v893_v58, 0.0  ;;  %v901_v30 = vmax.f32 %v885_v63, 0.0  ;;  %v1010_v34 = vadd.s32 4294967240, %v963_v18 }
 0x127   : > { %v874_v17 = vpop.permute.xlu1 %873  ;;  %v1006_v33 = vsub.s32 %v1003_v7, %v3381_v24 }
 0x128   : > { %938 = vadd.xlane.f32.xlu1 %v909_v57  ;;  %v895_v52 = vadd.f32 %v874_v17, %v831_v46  ;;  %v887_v4 = vadd.f32 %v874_v17, %v823_v56  ;;  %v1013_v47 = vsub.s32 %v1010_v34, %v3381_v24 }
 0x12a   : > { %922 = vadd.xlane.f32.xlu0 %v901_v30  ;;  %v911_v2 = vmax.f32 %v895_v52, 0.0  ;;  %v903_v21 = vmax.f32 %v887_v4, 0.0 }
 0x12c   : > { %940 = vadd.xlane.f32.xlu1 %v910_v40 }
 0x12e   : > { %924 = vadd.xlane.f32.xlu0 %v902_v38 }
 0x130   : > { %942 = vadd.xlane.f32.xlu1 %v911_v2 }
 0x132   : > { %926 = vadd.xlane.f32.xlu0 %v903_v21 }
 0x134   : > { %944 = vadd.xlane.f32.xlu1 %v912_v39 }
 0x136   : > { %928 = vadd.xlane.f32.xlu0 %v904_v41 }
 0x184   : > { %v915_v1 = vpop.xlane.xlu1 %914 }
 0x185   : > { %v967_v57 = vrot.slane %v915_v1, %v966_v61 }
 0x1a3   : > { %v917_v32 = vpop.xlane.xlu0 %916  ;;  %v933_v29 = vpop.xlane.xlu1 %932 }
 0x1a4   : > { %v972_v58 = vrot.slane %v917_v32, %v971_v35  ;;  %v1024_v3 = vrot.slane %v933_v29, %v971_v35  ;;  %v913_v32 = vld [vmem:[#allocation2] sm:$0x3] }
 0x1a6   : > { %v974_v46 = vsel %vm973_vm1, %v972_v58, %v967_v57 }
 0x1a7   : > { %v931_v48 = vpop.xlane.xlu0 %930  ;;  %v935_v31 = vpop.xlane.xlu1 %934 }
 0x1a8   : > { %v1020_v8 = vrot.slane %v931_v48, %v966_v61  ;;  %v1029_v11 = vrot.slane %v935_v31, %v978_v15 }
 0x1aa   : > { %v1025_v44 = vsel %vm973_vm1, %v1024_v3, %v1020_v8 }
 0x1ab   : > { %v919_v6 = vpop.xlane.xlu0 %918  ;;  %v937_v49 = vpop.xlane.xlu1 %936  ;;  %v1030_v22 = vsel %vm980_vm2, %v1029_v11, %v1025_v44 }
 0x1ac   : > { %v979_v12 = vrot.slane %v919_v6, %v978_v15  ;;  %v1034_v16 = vrot.slane %v937_v49, %v985_v23 }
 0x1ae   : > { %v981_v25 = vsel %vm980_vm2, %v979_v12, %v974_v46  ;;  %v1035_v60 = vsel %vm987_vm3, %v1034_v16, %v1030_v22 }
 0x1af   : > { %v921_v50 = vpop.xlane.xlu0 %920 }
 0x1b0   : > { %v986_v62 = vrot.slane %v921_v50, %v985_v23 }
 0x1b1   : > { %v939_v59 = vpop.xlane.xlu1 %938 }
 0x1b2   : > { %v1039_v13 = vrot.slane %v939_v59, %v992_v9  ;;  %v988_v4 = vsel %vm987_vm3, %v986_v62, %v981_v25 }
 0x1b3   : > { %v923_v5 = vpop.xlane.xlu0 %922 }
 0x1b4   : > { %v993_v17 = vrot.slane %v923_v5, %v992_v9  ;;  %v1040_v0 = vsel %vm994_vm4, %v1039_v13, %v1035_v60 }
 0x1b5   : > { %v941_v37 = vpop.xlane.xlu1 %940 }
 0x1b6   : > { %v1044_v30 = vrot.slane %v941_v37, %v999_v10  ;;  %v995_v2 = vsel %vm994_vm4, %v993_v17, %v988_v4 }
 0x1b7   : > { %v925_v63 = vpop.xlane.xlu0 %924 }
 0x1b8   : > { %v1000_v20 = vrot.slane %v925_v63, %v999_v10  ;;  %v1045_v21 = vsel %vm1001_vm5, %v1044_v30, %v1040_v0 }
 0x1b9   : > { %v943_v45 = vpop.xlane.xlu1 %942 }
 0x1ba   : > { %v1049_v56 = vrot.slane %v943_v45, %v1006_v33  ;;  %v1002_v42 = vsel %vm1001_vm5, %v1000_v20, %v995_v2 }
 0x1bb   : > { %v927_v19 = vpop.xlane.xlu0 %926 }
 0x1bc   : > { %v1007_v52 = vrot.slane %v927_v19, %v1006_v33  ;;  %v1050_v41 = vsel %vm1008_vm6, %v1049_v56, %v1045_v21 }
 0x1bd   : > { %v945_v40 = vpop.xlane.xlu1 %944 }
 0x1be   : > { %v1054_v38 = vrot.slane %v945_v40, %v1013_v47  ;;  %v1009_v1 = vsel %vm1008_vm6, %v1007_v52, %v1002_v42 }
 0x1bf   : > { %v929_v43 = vpop.xlane.xlu0 %928 }
 0x1c0   : > { %v1014_v39 = vrot.slane %v929_v43, %v1013_v47  ;;  %v1055_v29 = vsel %vm1015_vm7, %v1054_v38, %v1050_v41 }
 0x1c2   : > { %v1016_v48 = vsel %vm1015_vm7, %v1014_v39, %v1009_v1  ;;  %1065 = sbr.rel (%p2554_p5) target bundleno = 1263 (0x4ef), region = 98 }
 0x1c3   : > { %v1057_v31 = vsel %vm1056_vm8, %v1055_v29, %v1016_v48 }
 0x1c4   : > { %v1059_v6 = vadd.f32 %v1057_v31, %v913_v32 }
 0x1c6   : > { %1061 = vst.msk [vmem:[#allocation2] sm:$0x3] %vm1060_vm9, %v1059_v6 }
 0x1c7   : > { %v2822_v49 = vld [vmem:[%s3332_s21 + $0x64] ss:$16 sps:$4 sm:$0xff]   ;;  %v2824_v18 = vld [vmem:[%s3332_s21 + $0x6c] ss:$16 sps:$4 sm:$0xff]   ;;  %v3155_v50 = vmov 0   ;;  %vm1187_vm10 = vcmask 523264  }
 0x1c8   : > { %1223 = vmatprep.mubr.bf16.mxu0 %v3155_v50  ;;  %1264 = vmatprep.mubr.bf16.mxu1 %v3155_v50  ;;  %v2826_v53 = vld [vmem:[%s3332_s21 + $0x60] ss:$16 sps:$4 sm:$0xff]   ;;  %v2827_v55 = vld [vmem:[%s3332_s21 + $0x68] ss:$16 sps:$4 sm:$0xff]   ;;  %v2828_v59 = vld [vmem:[%s3332_s21 + $0x44] ss:$16 sps:$4 sm:$0xff]  }
 0x1c9   : > { %1199 = vmatprep.subr.bf16.mxu0 %v2822_v49  ;;  %1240 = vmatprep.subr.bf16.mxu1 %v2824_v18  ;;  %v2830_v36 = vld [vmem:[%s3332_s21 + $0x4c] ss:$16 sps:$4 sm:$0xff]   ;;  %v2832_v54 = vld [vmem:[%s3332_s21 + $0x40] ss:$16 sps:$4 sm:$0xff]   ;;  %v2833_v5 = vld [vmem:[%s3332_s21 + $0x48] ss:$16 sps:$4 sm:$0xff]  }
 0x1ca   : > { %1200 = vmatpush1.bf16.msra.mxu0 %v2826_v53  ;;  %1241 = vmatpush1.bf16.msra.mxu1 %v2827_v55  ;;  %v2834_v61 = vld [vmem:[%s3332_s21 + $0x24] ss:$16 sps:$4 sm:$0xff]   ;;  %v2836_v35 = vld [vmem:[%s3332_s21 + $0x2c] ss:$16 sps:$4 sm:$0xff]   ;;  %v2838_v26 = vld [vmem:[%s3332_s21 + $0x20] ss:$16 sps:$4 sm:$0xff]  }
 0x1cb   : > { %1201 = vmatprep.subr.bf16.mxu0 %v2828_v59  ;;  %1242 = vmatprep.subr.bf16.mxu1 %v2830_v36  ;;  %v2839_v15 = vld [vmem:[%s3332_s21 + $0x28] ss:$16 sps:$4 sm:$0xff]   ;;  %v2840_v37 = vld [vmem:[%s3332_s21 + $0x4] ss:$16 sps:$4 sm:$0xff]   ;;  %v2842_v7 = vld [vmem:[%s3332_s21 + $0xc] ss:$16 sps:$4 sm:$0xff]  }
 0x1cc   : > { %v2844_v34 = vld [vmem:[%s3332_s21] ss:$16 sps:$4 sm:$0xff]   ;;  %v2845_v23 = vld [vmem:[%s3332_s21 + $0x8] ss:$16 sps:$4 sm:$0xff]   ;;  %vm1273_vm11 = vcmask 1041408  }
 0x1cd   : > { %v1066_v8 = vld [vmem:[#allocation2] sm:$0x3]  ;;  %v2848_v38 = vld [vmem:[%s3351_s3 + $0xe4] ss:$16 sps:$4 sm:$0xff]  }
 0x1ce   : > { %1202 = vmatpush1.bf16.msra.mxu0 %v2832_v54  ;;  %1243 = vmatpush1.bf16.msra.mxu1 %v2833_v5  ;;  %v1067_v9 = vmul.f32 0.00390625, %v1066_v8  ;;  %v1085_v58 = vld [vmem:[%s3897_s11] sm:$0xf]  ;;  %v2851_v2 = vld [vmem:[%s3351_s3 + $0x2e4] ss:$16 sps:$4 sm:$0xff]  }
 0x1cf   : > { %1203 = vmatprep.subr.bf16.mxu0 %v2834_v61  ;;  %1244 = vmatprep.subr.bf16.mxu1 %v2836_v35  ;;  %v1090_v3 = vrot.slane %v1085_v58, %v3391_v28  ;;  %v1098_v10 = vrot.slane %v1085_v58, %v3424_v51  ;;  %v1094_v11 = vrot.slane %v1085_v58, %v3388_v27  ;;  %v2846_v4 = vld [vmem:[%s3351_s3 + $0xe0] ss:$16 sps:$4 sm:$0xff]   ;;  %v2854_v43 = vld [vmem:[%s3351_s3 + $0xc4] ss:$16 sps:$4 sm:$0xff]  }
 0x1d0   : > { %v1068_v63 = vpack.c.bf16 %v1067_v9, %v1067_v9  ;;  %v1102_v57 = vrot.slane %v1085_v58, %v3451_v14  ;;  %v2849_v0 = vld [vmem:[%s3351_s3 + $0x2e0] ss:$16 sps:$4 sm:$0xff]   ;;  %v2857_v21 = vld [vmem:[%s3351_s3 + $0x2c4] ss:$16 sps:$4 sm:$0xff]  }
 0x1d1   : > { %v2852_v42 = vld [vmem:[%s3351_s3 + $0xc0] ss:$16 sps:$4 sm:$0xff]   ;;  %v2860_v41 = vld [vmem:[%s3351_s3 + $0xa4] ss:$16 sps:$4 sm:$0xff]  }
 0x1d2   : > { %1204 = vmatpush1.bf16.msra.mxu0 %v2838_v26  ;;  %1245 = vmatpush1.bf16.msra.mxu1 %v2839_v15  ;;  %v2855_v39 = vld [vmem:[%s3351_s3 + $0x2c0] ss:$16 sps:$4 sm:$0xff]   ;;  %v2863_v1 = vld [vmem:[%s3351_s3 + $0x2a4] ss:$16 sps:$4 sm:$0xff]  }
 0x1d3   : > { %1205 = vmatprep.subr.bf16.mxu0 %v2840_v37  ;;  %1246 = vmatprep.subr.bf16.mxu1 %v2842_v7  ;;  %v2858_v32 = vld [vmem:[%s3351_s3 + $0xa0] ss:$16 sps:$4 sm:$0xff]   ;;  %v2866_v48 = vld [vmem:[%s3351_s3 + $0x84] ss:$16 sps:$4 sm:$0xff]  }
 0x1d4   : > { %v2861_v29 = vld [vmem:[%s3351_s3 + $0x2a0] ss:$16 sps:$4 sm:$0xff]   ;;  %v2869_v31 = vld [vmem:[%s3351_s3 + $0x284] ss:$16 sps:$4 sm:$0xff]  }
 0x1d5   : > { %v2864_v6 = vld [vmem:[%s3351_s3 + $0x80] ss:$16 sps:$4 sm:$0xff]   ;;  %v2872_v18 = vld [vmem:[%s3351_s3 + $0x64] ss:$16 sps:$4 sm:$0xff]  }
 0x1d6   : > { %1206 = vmatpush1.bf16.msra.mxu0 %v2844_v34  ;;  %1247 = vmatpush1.bf16.msra.mxu1 %v2845_v23  ;;  %v2867_v49 = vld [vmem:[%s3351_s3 + $0x280] ss:$16 sps:$4 sm:$0xff]   ;;  %v2875_v50 = vld [vmem:[%s3351_s3 + $0x264] ss:$16 sps:$4 sm:$0xff]  }
 0x1d7   : > { %2155 = vmatprep.subr.bf16.mxu0 %v2848_v38  ;;  %2196 = vmatprep.subr.bf16.mxu1 %v2851_v2  ;;  %v2870_v53 = vld [vmem:[%s3351_s3 + $0x60] ss:$16 sps:$4 sm:$0xff]   ;;  %v2878_v59 = vld [vmem:[%s3351_s3 + $0x44] ss:$16 sps:$4 sm:$0xff]  }
 0x1d8   : > { %v2873_v55 = vld [vmem:[%s3351_s3 + $0x260] ss:$16 sps:$4 sm:$0xff]   ;;  %v2881_v36 = vld [vmem:[%s3351_s3 + $0x244] ss:$16 sps:$4 sm:$0xff]  }
 0x1d9   : > { %2571 = vmatmul.mubr.msk.bf16.vlgmr.msra.gmra.mxu0 %vm1187_vm10, %v1068_v63  ;;  %2572 = vmatmul.mubr.msk.bf16.vlgmr.msra.gmra.mxu1 %vm1187_vm10, %v1068_v63  ;;  %v2876_v54 = vld [vmem:[%s3351_s3 + $0x40] ss:$16 sps:$4 sm:$0xff]   ;;  %v2884_v61 = vld [vmem:[%s3351_s3 + $0x24] ss:$16 sps:$4 sm:$0xff]  }
 0x1da   : > { %2156 = vmatpush1.bf16.msra.mxu0 %v2846_v4  ;;  %2197 = vmatpush1.bf16.msra.mxu1 %v2849_v0  ;;  %v2879_v5 = vld [vmem:[%s3351_s3 + $0x240] ss:$16 sps:$4 sm:$0xff]   ;;  %v2887_v35 = vld [vmem:[%s3351_s3 + $0x224] ss:$16 sps:$4 sm:$0xff]  }
 0x1db   : > { %2157 = vmatprep.subr.bf16.mxu0 %v2854_v43  ;;  %2198 = vmatprep.subr.bf16.mxu1 %v2857_v21  ;;  %v2882_v26 = vld [vmem:[%s3351_s3 + $0x20] ss:$16 sps:$4 sm:$0xff]   ;;  %v2890_v37 = vld [vmem:[%s3351_s3 + $0x4] ss:$16 sps:$4 sm:$0xff]  }
 0x1dc   : > { %v2885_v15 = vld [vmem:[%s3351_s3 + $0x220] ss:$16 sps:$4 sm:$0xff]   ;;  %v2893_v7 = vld [vmem:[%s3351_s3 + $0x204] ss:$16 sps:$4 sm:$0xff]  }
 0x1dd   : > { %v2888_v34 = vld [vmem:[%s3351_s3] ss:$16 sps:$4 sm:$0xff]   ;;  %v2896_v23 = vld [vmem:[%s3351_s3 + $0x1e4] ss:$16 sps:$4 sm:$0xff]  }
 0x1de   : > { %2158 = vmatpush1.bf16.msra.mxu0 %v2852_v42  ;;  %2199 = vmatpush1.bf16.msra.mxu1 %v2855_v39  ;;  %v2891_v8 = vld [vmem:[%s3351_s3 + $0x200] ss:$16 sps:$4 sm:$0xff]   ;;  %v2899_v9 = vld [vmem:[%s3351_s3 + $0x3e4] ss:$16 sps:$4 sm:$0xff]  }
 0x1df   : > { %2159 = vmatprep.subr.bf16.mxu0 %v2860_v41  ;;  %2200 = vmatprep.subr.bf16.mxu1 %v2863_v1  ;;  %v2894_v63 = vld [vmem:[%s3351_s3 + $0x1e0] ss:$16 sps:$4 sm:$0xff]   ;;  %v2914_v2 = vld [vmem:[%s3351_s3 + $0x184] ss:$16 sps:$4 sm:$0xff]  }
 0x1e0   : > { %v2897_v58 = vld [vmem:[%s3351_s3 + $0x3e0] ss:$16 sps:$4 sm:$0xff]   ;;  %v2917_v21 = vld [vmem:[%s3351_s3 + $0x384] ss:$16 sps:$4 sm:$0xff]  }
 0x1e1   : > { %v2906_v4 = vld [vmem:[%s3351_s3 + $0x1a0] ss:$16 sps:$4 sm:$0xff]   ;;  %v2920_v42 = vld [vmem:[%s3351_s3 + $0x164] ss:$16 sps:$4 sm:$0xff]  }
 0x1e2   : > { %2160 = vmatpush1.bf16.msra.mxu0 %v2858_v32  ;;  %2201 = vmatpush1.bf16.msra.mxu1 %v2861_v29  ;;  %v2909_v38 = vld [vmem:[%s3351_s3 + $0x3a0] ss:$16 sps:$4 sm:$0xff]   ;;  %v2923_v39 = vld [vmem:[%s3351_s3 + $0x364] ss:$16 sps:$4 sm:$0xff]  }
 0x1e3   : > { %2161 = vmatprep.subr.bf16.mxu0 %v2866_v48  ;;  %2202 = vmatprep.subr.bf16.mxu1 %v2869_v31  ;;  %v2912_v0 = vld [vmem:[%s3351_s3 + $0x180] ss:$16 sps:$4 sm:$0xff]   ;;  %v2926_v32 = vld [vmem:[%s3351_s3 + $0x144] ss:$16 sps:$4 sm:$0xff]  }
 0x1e4   : > { %v2915_v43 = vld [vmem:[%s3351_s3 + $0x380] ss:$16 sps:$4 sm:$0xff]   ;;  %v2929_v29 = vld [vmem:[%s3351_s3 + $0x344] ss:$16 sps:$4 sm:$0xff]  }
 0x1e5   : > { %v2918_v41 = vld [vmem:[%s3351_s3 + $0x160] ss:$16 sps:$4 sm:$0xff]  }
 0x1e6   : > { %2162 = vmatpush1.bf16.msra.mxu0 %v2864_v6  ;;  %2203 = vmatpush1.bf16.msra.mxu1 %v2867_v49  ;;  %v2921_v1 = vld [vmem:[%s3351_s3 + $0x360] ss:$16 sps:$4 sm:$0xff]   ;;  %v2932_v6 = vld [vmem:[%s3351_s3 + $0x124] ss:$16 sps:$4 sm:$0xff]  }
 0x1e7   : > { %2163 = vmatprep.subr.bf16.mxu0 %v2872_v18  ;;  %2204 = vmatprep.subr.bf16.mxu1 %v2875_v50  ;;  %v2924_v48 = vld [vmem:[%s3351_s3 + $0x140] ss:$16 sps:$4 sm:$0xff]   ;;  %v2935_v49 = vld [vmem:[%s3351_s3 + $0x324] ss:$16 sps:$4 sm:$0xff]  }
 0x1e8   : > { %v2927_v31 = vld [vmem:[%s3351_s3 + $0x340] ss:$16 sps:$4 sm:$0xff]  }
 0x1e9   : > { %v2930_v18 = vld [vmem:[%s3351_s3 + $0x120] ss:$16 sps:$4 sm:$0xff]  }
 0x1ea   : > { %2164 = vmatpush1.bf16.msra.mxu0 %v2870_v53  ;;  %2205 = vmatpush1.bf16.msra.mxu1 %v2873_v55  ;;  %v2933_v50 = vld [vmem:[%s3351_s3 + $0x320] ss:$16 sps:$4 sm:$0xff]   ;;  %v2938_v53 = vld [vmem:[%s3351_s3 + $0x104] ss:$16 sps:$4 sm:$0xff]  }
 0x1eb   : > { %2165 = vmatprep.subr.bf16.mxu0 %v2878_v59  ;;  %2206 = vmatprep.subr.bf16.mxu1 %v2881_v36  ;;  %v2941_v55 = vld [vmem:[%s3351_s3 + $0x304] ss:$16 sps:$4 sm:$0xff]   ;;  %v2936_v59 = vld [vmem:[%s3351_s3 + $0x100] ss:$16 sps:$4 sm:$0xff]  }
 0x1ec   : > { %v2939_v36 = vld [vmem:[%s3351_s3 + $0x300] ss:$16 sps:$4 sm:$0xff]  }
 0x1ee   : > { %2166 = vmatpush1.bf16.msra.mxu0 %v2876_v54  ;;  %2207 = vmatpush1.bf16.msra.mxu1 %v2879_v5  ;;  %v2944_v54 = vld [vmem:[%s3351_s3 + $0xec] ss:$16 sps:$4 sm:$0xff]  }
 0x1ef   : > { %2167 = vmatprep.subr.bf16.mxu0 %v2884_v61  ;;  %2208 = vmatprep.subr.bf16.mxu1 %v2887_v35  ;;  %v2947_v5 = vld [vmem:[%s3351_s3 + $0x2ec] ss:$16 sps:$4 sm:$0xff]  }
 0x1f2   : > { %2168 = vmatpush1.bf16.msra.mxu0 %v2882_v26  ;;  %2209 = vmatpush1.bf16.msra.mxu1 %v2885_v15  ;;  %v1309_v15 = vld [vmem:[%s520_s0] sm:$0xf] }
 0x1f3   : > { %2169 = vmatprep.subr.bf16.mxu0 %v2890_v37  ;;  %2210 = vmatprep.subr.bf16.mxu1 %v2893_v7  ;;  %v1335_v37 = vld [vmem:[%s524_s16] sm:$0xf]  ;;  %v1318_v7 = vrot.slane %v1309_v15, %v3388_v27 }
 0x1f6   : > { %2170 = vmatpush1.bf16.msra.mxu0 %v2888_v34  ;;  %2211 = vmatpush1.bf16.msra.mxu1 %v2891_v8  ;;  %v1326_v34 = vrot.slane %v1309_v15, %v3451_v14  ;;  %v1314_v8 = vrot.slane %v1309_v15, %v3391_v28 }
 0x1f7   : > { %2171 = vmatprep.subr.bf16.mxu0 %v2896_v23  ;;  %2212 = vmatprep.subr.bf16.mxu1 %v2899_v9  ;;  %v1322_v23 = vrot.slane %v1309_v15, %v3424_v51  ;;  %v2990_v15 = vld [vmem:[%s3351_s3 + $0x1e8] ss:$16 sps:$4 sm:$0xff]  }
 0x1fa   : > { %2172 = vmatpush2.bf16.msra.mxu0 %v2894_v63  ;;  %2213 = vmatpush2.bf16.msra.mxu1 %v2897_v58  ;;  %v1344_v63 = vrot.slane %v1335_v37, %v3388_v27  ;;  %v1352_v58 = vrot.slane %v1335_v37, %v3451_v14 }
 0x299   : > { %v1225_v12 = vpop.f32.mrf.mxu0  ;;  %v1266_v33 = vpop.f32.mrf.mxu1 }
 0x29a   : > { %v3587_v45 = vadd.f32 %v1225_v12, %v1090_v3  ;;  %v3589_v47 = vadd.f32 %v1266_v33, %v1098_v10  ;;  %v2902_v3 = vld [vmem:[%s3351_s3 + $0x1c4] ss:$16 sps:$4 sm:$0xff]   ;;  %v2903_v12 = vld [vmem:[%s3351_s3 + $0x3c0] ss:$16 sps:$4 sm:$0xff]  }
 0x29b   : > { %v1227_v44 = vpop.f32.mrf.mxu0  ;;  %v1268_v16 = vpop.f32.mrf.mxu1  ;;  %v2905_v10 = vld [vmem:[%s3351_s3 + $0x3c4] ss:$16 sps:$4 sm:$0xff]   ;;  %2173 = vmatprep.subr.bf16.mxu0 %v2902_v3  ;;  %v1340_v3 = vrot.slane %v1335_v37, %v3391_v28 }
 0x29c   : > { %v3592_v62 = vadd.f32 %v1227_v44, %v1094_v11  ;;  %v1274_v19 = vsel %vm1273_vm11, %v3587_v45, 0.0  ;;  %v1277_v46 = vsel %vm1273_vm11, %v3589_v47, 0.0  ;;  %v3600_v20 = vadd.f32 %v1268_v16, %v1102_v57  ;;  %v2900_v11 = vld [vmem:[%s3351_s3 + $0x1c0] ss:$16 sps:$4 sm:$0xff]   ;;  %2214 = vmatprep.subr.bf16.mxu1 %v2905_v10 }
 0x29d   : > { %v1229_v13 = vpop.f32.mrf.mxu0  ;;  %v1270_v17 = vpop.f32.mrf.mxu1  ;;  %2174 = vmatpush2.bf16.msra.mxu0 %v2900_v11  ;;  %2215 = vmatpush2.bf16.msra.mxu1 %v2903_v12  ;;  %v1348_v10 = vrot.slane %v1335_v37, %v3424_v51  ;;  %v2993_v37 = vld [vmem:[%s3351_s3 + $0x3e8] ss:$16 sps:$4 sm:$0xff]  }
 0x29e   : > { %v1275_v30 = vsel %vm1273_vm11, %v3592_v62, 0.0  ;;  %v1279_v40 = vsel %vm1273_vm11, %v3600_v20, 0.0 }
 0x29f   : > { %v1276_v22 = vadd.f32 %v1275_v30, %v1274_v19  ;;  %v1230_v25 = vpop.f32.mrf.mxu0  ;;  %v1271_v56 = vpop.f32.mrf.mxu1 }
 0x2a1   : > { %v1278_v52 = vadd.f32 %v1277_v46, %v1276_v22 }
 0x2a3   : > { %v1280_v60 = vadd.f32 %v1279_v40, %v1278_v52  ;;  %v2908_v40 = vld [vmem:[%s3351_s3 + $0x1a4] ss:$16 sps:$4 sm:$0xff]  }
 0x2a4   : > { %2175 = vmatprep.subr.bf16.mxu0 %v2908_v40  ;;  %v2953_v40 = vld [vmem:[%s3351_s3 + $0x2cc] ss:$16 sps:$4 sm:$0xff]  }
 0x2a5   : > { %1281 = vadd.xlane.f32.xlu0 %v1280_v60  ;;  %v2911_v60 = vld [vmem:[%s3351_s3 + $0x3a4] ss:$16 sps:$4 sm:$0xff]   ;;  %2176 = vmatpush2.bf16.msra.mxu0 %v2906_v4  ;;  %v2951_v4 = vld [vmem:[%s3351_s3 + $0x2c8] ss:$16 sps:$4 sm:$0xff]  }
 0x2a6   : > { %2216 = vmatprep.subr.bf16.mxu1 %v2911_v60  ;;  %2177 = vmatprep.subr.bf16.mxu0 %v2914_v2  ;;  %v2948_v60 = vld [vmem:[%s3351_s3 + $0xc8] ss:$16 sps:$4 sm:$0xff]  }
 0x2a7   : > { %2217 = vmatpush2.bf16.msra.mxu1 %v2909_v38  ;;  %v2956_v38 = vld [vmem:[%s3351_s3 + $0xac] ss:$16 sps:$4 sm:$0xff]   ;;  %v2954_v2 = vld [vmem:[%s3351_s3 + $0xa8] ss:$16 sps:$4 sm:$0xff]  }
 0x2a8   : > { %2218 = vmatprep.subr.bf16.mxu1 %v2917_v21  ;;  %v2962_v21 = vld [vmem:[%s3351_s3 + $0x8c] ss:$16 sps:$4 sm:$0xff]  }
 0x2a9   : > { %2178 = vmatpush2.bf16.msra.mxu0 %v2912_v0  ;;  %v2959_v0 = vld [vmem:[%s3351_s3 + $0x2ac] ss:$16 sps:$4 sm:$0xff]  }
 0x2aa   : > { %2179 = vmatprep.subr.bf16.mxu0 %v2920_v42  ;;  %v2965_v42 = vld [vmem:[%s3351_s3 + $0x28c] ss:$16 sps:$4 sm:$0xff]  }
 0x2ab   : > { %2219 = vmatpush2.bf16.msra.mxu1 %v2915_v43  ;;  %v2957_v43 = vld [vmem:[%s3351_s3 + $0x2a8] ss:$16 sps:$4 sm:$0xff]  }
 0x2ac   : > { %2220 = vmatprep.subr.bf16.mxu1 %v2923_v39  ;;  %v2960_v39 = vld [vmem:[%s3351_s3 + $0x88] ss:$16 sps:$4 sm:$0xff]  }
 0x2ad   : > { %2180 = vmatpush2.bf16.msra.mxu0 %v2918_v41  ;;  %v2963_v41 = vld [vmem:[%s3351_s3 + $0x288] ss:$16 sps:$4 sm:$0xff]  }
 0x2ae   : > { %2181 = vmatprep.subr.bf16.mxu0 %v2926_v32  ;;  %v2971_v32 = vld [vmem:[%s3351_s3 + $0x26c] ss:$16 sps:$4 sm:$0xff]  }
 0x2af   : > { %2221 = vmatpush2.bf16.msra.mxu1 %v2921_v1  ;;  %v2968_v1 = vld [vmem:[%s3351_s3 + $0x6c] ss:$16 sps:$4 sm:$0xff]  }
 0x2b0   : > { %2222 = vmatprep.subr.bf16.mxu1 %v2929_v29  ;;  %v2966_v29 = vld [vmem:[%s3351_s3 + $0x68] ss:$16 sps:$4 sm:$0xff]  }
 0x2b1   : > { %2182 = vmatpush2.bf16.msra.mxu0 %v2924_v48  ;;  %v2969_v48 = vld [vmem:[%s3351_s3 + $0x268] ss:$16 sps:$4 sm:$0xff]  }
 0x2b2   : > { %2183 = vmatprep.subr.bf16.mxu0 %v2932_v6  ;;  %v2977_v6 = vld [vmem:[%s3351_s3 + $0x24c] ss:$16 sps:$4 sm:$0xff]  }
 0x2b3   : > { %2223 = vmatpush2.bf16.msra.mxu1 %v2927_v31  ;;  %v2974_v31 = vld [vmem:[%s3351_s3 + $0x4c] ss:$16 sps:$4 sm:$0xff]  }
 0x2b4   : > { %2224 = vmatprep.subr.bf16.mxu1 %v2935_v49  ;;  %v2972_v49 = vld [vmem:[%s3351_s3 + $0x48] ss:$16 sps:$4 sm:$0xff]  }
 0x2b5   : > { %2184 = vmatpush2.bf16.msra.mxu0 %v2930_v18  ;;  %v2975_v18 = vld [vmem:[%s3351_s3 + $0x248] ss:$16 sps:$4 sm:$0xff]  }
 0x2b6   : > { %2185 = vmatprep.subr.bf16.mxu0 %v2938_v53  ;;  %v2983_v53 = vld [vmem:[%s3351_s3 + $0x22c] ss:$16 sps:$4 sm:$0xff]  }
 0x2b7   : > { %2225 = vmatpush2.bf16.msra.mxu1 %v2933_v50  ;;  %v2980_v50 = vld [vmem:[%s3351_s3 + $0x2c] ss:$16 sps:$4 sm:$0xff]  }
 0x2b8   : > { %2226 = vmatprep.subr.bf16.mxu1 %v2941_v55  ;;  %v2978_v55 = vld [vmem:[%s3351_s3 + $0x28] ss:$16 sps:$4 sm:$0xff]  }
 0x2b9   : > { %2186 = vmatpush2.bf16.msra.mxu0 %v2936_v59  ;;  %v2981_v59 = vld [vmem:[%s3351_s3 + $0x228] ss:$16 sps:$4 sm:$0xff]  }
 0x2ba   : > { %2237 = vmatprep.subr.bf16.mxu0 %v2944_v54  ;;  %v2989_v54 = vld [vmem:[%s3351_s3 + $0x20c] ss:$16 sps:$4 sm:$0xff]  }
 0x2bb   : > { %2227 = vmatpush2.bf16.msra.mxu1 %v2939_v36  ;;  %v2986_v36 = vld [vmem:[%s3351_s3 + $0xc] ss:$16 sps:$4 sm:$0xff]  }
 0x2bc   : > { %2278 = vmatprep.subr.bf16.mxu1 %v2947_v5  ;;  %v2984_v5 = vld [vmem:[%s3351_s3 + $0x8] ss:$16 sps:$4 sm:$0xff]  }
 0x32e   : > { %v1282_v33 = vpop.xlane.xlu0 %1281 }
 0x32f   : > { %v1284_v57 = vmul.f32 0.001953125, %v1282_v33 }
 0x331   : > { %v3645_v44 = vsub.f32 %v3587_v45, %v1284_v57  ;;  %v3648_v16 = vsub.f32 %v3592_v62, %v1284_v57  ;;  %v3651_v13 = vsub.f32 %v3589_v47, %v1284_v57  ;;  %v3654_v17 = vsub.f32 %v3600_v20, %v1284_v57 }
 0x333   : > { %v1289_v19 = vmul.f32 %v3645_v44, %v3645_v44  ;;  %v1290_v45 = vmul.f32 %v3648_v16, %v3648_v16  ;;  %v1291_v46 = vmul.f32 %v3651_v13, %v3651_v13  ;;  %v1292_v62 = vmul.f32 %v3654_v17, %v3654_v17 }
 0x335   : > { %v1293_v47 = vsel %vm1273_vm11, %v1289_v19, 0.0  ;;  %v1294_v30 = vsel %vm1273_vm11, %v1290_v45, 0.0  ;;  %v1296_v22 = vsel %vm1273_vm11, %v1291_v46, 0.0  ;;  %v1298_v56 = vsel %vm1273_vm11, %v1292_v62, 0.0 }
 0x336   : > { %v1295_v20 = vadd.f32 %v1294_v30, %v1293_v47 }
 0x338   : > { %v1297_v25 = vadd.f32 %v1296_v22, %v1295_v20 }
 0x33a   : > { %v1299_v52 = vadd.f32 %v1298_v56, %v1297_v25  ;;  %v2942_v56 = vld [vmem:[%s3351_s3 + $0xe8] ss:$16 sps:$4 sm:$0xff]  }
 0x33c   : > { %1300 = vadd.xlane.f32.xlu0 %v1299_v52  ;;  %v2950_v52 = vld [vmem:[%s3351_s3 + $0xcc] ss:$16 sps:$4 sm:$0xff]  }
 0x3c5   : > { %v1301_v61 = vpop.xlane.xlu0 %1300 }
 0x3c6   : > { %v1302_v35 = vmul.f32 0.001953125, %v1301_v61  ;;  %v2987_v61 = vld [vmem:[%s3351_s3 + $0x208] ss:$16 sps:$4 sm:$0xff]  }
 0x3c8   : > { %v1303_v26 = vadd.f32 1e-05, %v1302_v35  ;;  %v2992_v35 = vld [vmem:[%s3351_s3 + $0x1ec] ss:$16 sps:$4 sm:$0xff]  }
 0x3ca   : > { %3038 = vrsqrt.f32 %v1303_v26  ;;  %v2995_v26 = vld [vmem:[%s3351_s3 + $0x3ec] ss:$16 sps:$4 sm:$0xff]  }
 0x3d7   : > { %v3039_v9 = vpop.eup %3038 }
 0x3d8   : > { %v1306_v11 = vmul.f32 %v3039_v9, %v3648_v16  ;;  %v1308_v12 = vmul.f32 %v3039_v9, %v3654_v17  ;;  %v1305_v33 = vmul.f32 %v3039_v9, %v3645_v44  ;;  %v1307_v57 = vmul.f32 %v3039_v9, %v3651_v13  ;;  %v2945_v17 = vld [vmem:[%s3351_s3 + $0x2e8] ss:$16 sps:$4 sm:$0xff]   ;;  %v3004_v9 = vld [vmem:[%s3351_s3 + $0x1ac] ss:$16 sps:$4 sm:$0xff]  }
 0x3da   : > { %v1332_v19 = vmul.f32 %v1318_v7, %v1306_v11  ;;  %v1334_v45 = vmul.f32 %v1326_v34, %v1308_v12  ;;  %v1331_v46 = vmul.f32 %v1314_v8, %v1305_v33  ;;  %v1333_v62 = vmul.f32 %v1322_v23, %v1307_v57  ;;  %v2998_v7 = vld [vmem:[%s3351_s3 + $0x1cc] ss:$16 sps:$4 sm:$0xff]   ;;  %v2996_v8 = vld [vmem:[%s3351_s3 + $0x1c8] ss:$16 sps:$4 sm:$0xff]  }
 0x3db   : > { %v3001_v34 = vld [vmem:[%s3351_s3 + $0x3cc] ss:$16 sps:$4 sm:$0xff]   ;;  %v2999_v23 = vld [vmem:[%s3351_s3 + $0x3c8] ss:$16 sps:$4 sm:$0xff]  }
 0x3dc   : > { %v1358_v47 = vadd.f32 %v1344_v63, %v1332_v19  ;;  %v1360_v30 = vadd.f32 %v1352_v58, %v1334_v45  ;;  %v1357_v20 = vadd.f32 %v1340_v3, %v1331_v46  ;;  %v1359_v22 = vadd.f32 %v1348_v10, %v1333_v62  ;;  %v3007_v63 = vld [vmem:[%s3351_s3 + $0x3ac] ss:$16 sps:$4 sm:$0xff]   ;;  %v3002_v58 = vld [vmem:[%s3351_s3 + $0x1a8] ss:$16 sps:$4 sm:$0xff]  }
 0x3dd   : > { %v3005_v3 = vld [vmem:[%s3351_s3 + $0x3a8] ss:$16 sps:$4 sm:$0xff]   ;;  %v3010_v10 = vld [vmem:[%s3351_s3 + $0x18c] ss:$16 sps:$4 sm:$0xff]  }
 0x3de   : > { %v1362_v25 = vpack.c.bf16 %v1358_v47, %v1358_v47  ;;  %v1364_v16 = vpack.c.bf16 %v1360_v30, %v1360_v30  ;;  %v3718_v44 = vpack.c.bf16 %v1357_v20, %v1357_v20  ;;  %v3720_v13 = vpack.c.bf16 %v1359_v22, %v1359_v22  ;;  %v3013_v11 = vld [vmem:[%s3351_s3 + $0x38c] ss:$16 sps:$4 sm:$0xff]   ;;  %v3008_v12 = vld [vmem:[%s3351_s3 + $0x188] ss:$16 sps:$4 sm:$0xff]  }
 0x3df   : > { %v3011_v33 = vld [vmem:[%s3351_s3 + $0x388] ss:$16 sps:$4 sm:$0xff]   ;;  %v3016_v57 = vld [vmem:[%s3351_s3 + $0x16c] ss:$16 sps:$4 sm:$0xff]  }
 0x3e0   : > { %2187 = vmatprep.mubr.bf16.mxu0 %v1362_v25  ;;  %2228 = vmatprep.mubr.bf16.mxu1 %v1364_v16  ;;  %v3019_v19 = vld [vmem:[%s3351_s3 + $0x36c] ss:$16 sps:$4 sm:$0xff]   ;;  %v3014_v45 = vld [vmem:[%s3351_s3 + $0x168] ss:$16 sps:$4 sm:$0xff]  }
 0x3e1   : > { %2188 = vmatmul.mubr.bf16.vlgmr.msra.gmra.mxu0 %v3718_v44  ;;  %2229 = vmatmul.mubr.bf16.vlgmr.msra.gmra.mxu1 %v3720_v13  ;;  %v3017_v46 = vld [vmem:[%s3351_s3 + $0x368] ss:$16 sps:$4 sm:$0xff]   ;;  %v3022_v62 = vld [vmem:[%s3351_s3 + $0x14c] ss:$16 sps:$4 sm:$0xff]  }
 0x3e2   : > { %2238 = vmatpush1.bf16.msra.mxu0 %v2942_v56  ;;  %2279 = vmatpush1.bf16.msra.mxu1 %v2945_v17  ;;  %v3025_v47 = vld [vmem:[%s3351_s3 + $0x34c] ss:$16 sps:$4 sm:$0xff]   ;;  %v3020_v30 = vld [vmem:[%s3351_s3 + $0x148] ss:$16 sps:$4 sm:$0xff]  }
 0x3e3   : > { %2269 = vmatprep.mubr.bf16.mxu0 %v1362_v25  ;;  %2310 = vmatprep.mubr.bf16.mxu1 %v1364_v16  ;;  %v3023_v20 = vld [vmem:[%s3351_s3 + $0x348] ss:$16 sps:$4 sm:$0xff]   ;;  %v3028_v22 = vld [vmem:[%s3351_s3 + $0x12c] ss:$16 sps:$4 sm:$0xff]  }
 0x3e4   : > { %2239 = vmatprep.subr.bf16.mxu0 %v2950_v52  ;;  %2280 = vmatprep.subr.bf16.mxu1 %v2953_v40  ;;  %v3031_v25 = vld [vmem:[%s3351_s3 + $0x32c] ss:$16 sps:$4 sm:$0xff]   ;;  %v3026_v16 = vld [vmem:[%s3351_s3 + $0x128] ss:$16 sps:$4 sm:$0xff]  }
 0x3e5   : > { %v3029_v56 = vld [vmem:[%s3351_s3 + $0x328] ss:$16 sps:$4 sm:$0xff]   ;;  %v3034_v17 = vld [vmem:[%s3351_s3 + $0x10c] ss:$16 sps:$4 sm:$0xff]  }
 0x3e6   : > { %2240 = vmatpush1.bf16.msra.mxu0 %v2948_v60  ;;  %2281 = vmatpush1.bf16.msra.mxu1 %v2951_v4  ;;  %v3037_v52 = vld [vmem:[%s3351_s3 + $0x30c] ss:$16 sps:$4 sm:$0xff]   ;;  %v3032_v40 = vld [vmem:[%s3351_s3 + $0x108] ss:$16 sps:$4 sm:$0xff]   ;;  %v1493_v4 = vld [vmem:[%s533_s13] sm:$0xf] }
 0x3e7   : > { %2241 = vmatprep.subr.bf16.mxu0 %v2956_v38  ;;  %2282 = vmatprep.subr.bf16.mxu1 %v2959_v0  ;;  %v3035_v60 = vld [vmem:[%s3351_s3 + $0x308] ss:$16 sps:$4 sm:$0xff]   ;;  %v1498_v38 = vrot.slane %v1493_v4, %v3391_v28  ;;  %v1502_v0 = vrot.slane %v1493_v4, %v3388_v27  ;;  %v1510_v28 = vrot.slane %v1493_v4, %v3451_v14 }
 0x3ea   : > { %2242 = vmatpush1.bf16.msra.mxu0 %v2954_v2  ;;  %2283 = vmatpush1.bf16.msra.mxu1 %v2957_v43 }
 0x3eb   : > { %2243 = vmatprep.subr.bf16.mxu0 %v2962_v21  ;;  %2284 = vmatprep.subr.bf16.mxu1 %v2965_v42 }
 0x3ee   : > { %2244 = vmatpush1.bf16.msra.mxu0 %v2960_v39  ;;  %2285 = vmatpush1.bf16.msra.mxu1 %v2963_v41 }
 0x3ef   : > { %2245 = vmatprep.subr.bf16.mxu0 %v2968_v1  ;;  %2286 = vmatprep.subr.bf16.mxu1 %v2971_v32 }
 0x3f2   : > { %2246 = vmatpush1.bf16.msra.mxu0 %v2966_v29  ;;  %2287 = vmatpush1.bf16.msra.mxu1 %v2969_v48 }
 0x3f3   : > { %2247 = vmatprep.subr.bf16.mxu0 %v2974_v31  ;;  %2288 = vmatprep.subr.bf16.mxu1 %v2977_v6  ;;  %v3156_v6 = vmov 1983009808  }
 0x3f6   : > { %2248 = vmatpush1.bf16.msra.mxu0 %v2972_v49  ;;  %2289 = vmatpush1.bf16.msra.mxu1 %v2975_v18  ;;  %v2326_v49 = vunpack.c.l.s4 %v3156_v6  ;;  %v1506_v18 = vrot.slane %v1493_v4, %v3424_v51 }
 0x3f7   : > { %2249 = vmatprep.subr.bf16.mxu0 %v2980_v50  ;;  %2290 = vmatprep.subr.bf16.mxu1 %v2983_v53 }
 0x3f8   : > { %v2327_v53 = vunpack.c.0.s8 %v2326_v49 }
 0x3fa   : > { %2250 = vmatpush1.bf16.msra.mxu0 %v2978_v55  ;;  %2291 = vmatpush1.bf16.msra.mxu1 %v2981_v59 }
 0x3fb   : > { %2251 = vmatprep.subr.bf16.mxu0 %v2986_v36  ;;  %2292 = vmatprep.subr.bf16.mxu1 %v2989_v54 }
 0x3fe   : > { %2252 = vmatpush1.bf16.msra.mxu0 %v2984_v5  ;;  %2293 = vmatpush1.bf16.msra.mxu1 %v2987_v61 }
 0x3ff   : > { %2253 = vmatprep.subr.bf16.mxu0 %v2992_v35  ;;  %2294 = vmatprep.subr.bf16.mxu1 %v2995_v26  ;;  %v2330_v35 = vsub.s32 %v2327_v53, %v3381_v24 }
 0x402   : > { %2254 = vmatpush2.bf16.msra.mxu0 %v2990_v15  ;;  %2295 = vmatpush2.bf16.msra.mxu1 %v2993_v37 }
 0x403   : > { %2255 = vmatprep.subr.bf16.mxu0 %v2998_v7  ;;  %2296 = vmatprep.subr.bf16.mxu1 %v3001_v34 }
 0x406   : > { %2256 = vmatpush2.bf16.msra.mxu0 %v2996_v8  ;;  %2297 = vmatpush2.bf16.msra.mxu1 %v2999_v23 }
 0x407   : > { %2257 = vmatprep.subr.bf16.mxu0 %v3004_v9  ;;  %2298 = vmatprep.subr.bf16.mxu1 %v3007_v63 }
 0x40a   : > { %2258 = vmatpush2.bf16.msra.mxu0 %v3002_v58  ;;  %2299 = vmatpush2.bf16.msra.mxu1 %v3005_v3 }
 0x40b   : > { %2259 = vmatprep.subr.bf16.mxu0 %v3010_v10  ;;  %2300 = vmatprep.subr.bf16.mxu1 %v3013_v11 }
 0x40e   : > { %2260 = vmatpush2.bf16.msra.mxu0 %v3008_v12  ;;  %2301 = vmatpush2.bf16.msra.mxu1 %v3011_v33 }
 0x40f   : > { %2261 = vmatprep.subr.bf16.mxu0 %v3016_v57  ;;  %2302 = vmatprep.subr.bf16.mxu1 %v3019_v19 }
 0x412   : > { %2262 = vmatpush2.bf16.msra.mxu0 %v3014_v45  ;;  %2303 = vmatpush2.bf16.msra.mxu1 %v3017_v46 }
 0x413   : > { %2263 = vmatprep.subr.bf16.mxu0 %v3022_v62  ;;  %2304 = vmatprep.subr.bf16.mxu1 %v3025_v47 }
 0x416   : > { %2264 = vmatpush2.bf16.msra.mxu0 %v3020_v30  ;;  %2305 = vmatpush2.bf16.msra.mxu1 %v3023_v20 }
 0x417   : > { %2265 = vmatprep.subr.bf16.mxu0 %v3028_v22  ;;  %2306 = vmatprep.subr.bf16.mxu1 %v3031_v25 }
 0x41a   : > { %2266 = vmatpush2.bf16.msra.mxu0 %v3026_v16  ;;  %2307 = vmatpush2.bf16.msra.mxu1 %v3029_v56 }
 0x41b   : > { %2267 = vmatprep.subr.bf16.mxu0 %v3034_v17  ;;  %2308 = vmatprep.subr.bf16.mxu1 %v3037_v52 }
 0x41e   : > { %2268 = vmatpush2.bf16.msra.mxu0 %v3032_v40  ;;  %2309 = vmatpush2.bf16.msra.mxu1 %v3035_v60 }
 0x421   : > { %2270 = vmatmul.mubr.bf16.vlgmr.msra.gmra.mxu0 %v3718_v44  ;;  %2311 = vmatmul.mubr.bf16.vlgmr.msra.gmra.mxu1 %v3720_v13 }
 0x4a1   : > { %v2189_v2 = vpop.f32.mrf.mxu0  ;;  %v2230_v43 = vpop.f32.mrf.mxu1 }
 0x4a2   : > { %v2190_v21 = vadd.f32 %v2189_v2, %v1498_v38 }
 0x4a3   : > { %v2191_v42 = vpop.f32.mrf.mxu0  ;;  %v2232_v39 = vpop.f32.mrf.mxu1 }
 0x4a4   : > { %v2231_v41 = vadd.f32 %v2230_v43, %v2190_v21  ;;  %v2192_v1 = vadd.f32 %v2191_v42, %v1502_v0 }
 0x4a5   : > { %v2193_v32 = vpop.f32.mrf.mxu0  ;;  %v2234_v44 = vpop.f32.mrf.mxu1 }
 0x4a6   : > { %v2233_v29 = vadd.f32 %v2232_v39, %v2192_v1 }
 0x4a7   : > { %v2194_v13 = vpop.f32.mrf.mxu0  ;;  %v2235_v48 = vpop.f32.mrf.mxu1 }
 0x4a8   : > { %v2323_v31 = vcombine.low %v2231_v41, %v2233_v29 }
 0x4aa   : > { %v2331_v51 = vrot.slane %v2323_v31, %v2330_v35 }
 0x4e1   : > { %v2271_v27 = vpop.f32.mrf.mxu0  ;;  %v2312_v50 = vpop.f32.mrf.mxu1 }
 0x4e2   : > { %v2272_v55 = vadd.f32 %v2271_v27, %v1506_v18 }
 0x4e3   : > { %v2273_v59 = vpop.f32.mrf.mxu0  ;;  %v2314_v36 = vpop.f32.mrf.mxu1 }
 0x4e4   : > { %v2274_v54 = vadd.f32 %v2273_v59, %v1510_v28  ;;  %v2313_v26 = vadd.f32 %v2312_v50, %v2272_v55 }
 0x4e5   : > { %v2275_v5 = vpop.f32.mrf.mxu0  ;;  %v2316_v61 = vpop.f32.mrf.mxu1 }
 0x4e6   : > { %v2315_v15 = vadd.f32 %v2314_v36, %v2274_v54 }
 0x4e7   : > { %v2276_v37 = vpop.f32.mrf.mxu0  ;;  %v2317_v7 = vpop.f32.mrf.mxu1 }
 0x4e8   : > { %v2324_v34 = vcombine.low %v2313_v26, %v2315_v15 }
 0x4ea   : > { %v2338_v8 = vrot.slane %v2324_v34, %v2330_v35 }
 0x4ec   : > { %v2339_v14 = vcombine.low %v2331_v51, %v2338_v8 }
 0x4ee   : > { %2341 = vst [vmem:[%s497_s29] sm:$0xff] %v2339_v14 }
 0x4ef PF: > { %s2710_s3 = sshll.u32 %s3136_s15, 7  ;;  %s3898_s26 = sld [smem:[#allocation22_spill]] }
 0x4f0   : > { %s2357_s17 = sshll.u32 %s497_s29, 4  ;;  %s3899_s24 = sand.u32 1, %s3116_s10   ;;  %s2358_s17 = int_to_ptr.vmem [resolvable:$true] %s2357_s17 }
 0x4f1   : > { %s2343_s16 = scalar_lea.sflag [#allocation5], %s3899_s24  ;;  %s3040_s28 = scalar_lea.vmem %s2358_s17, 128 }
 0x4f2   : > { %p3041_p6 = scmp.ne.s32.totalorder %s2358_s17, %s3040_s28  ;;  %s3157_s30 = smov [#allocation4]  }
 0x4f3   : > { %s3044_s9 = sshll.u32 %s3157_s30, 4  ;;  %s3045_s9 = int_to_ptr.vmem [resolvable:$false] %s3044_s9 }
 0x4f4   : > { %p3042_p8 = pnand %p3041_p6, %p3280_p7  ;;  %s3046_s13 = scalar_lea.vmem %s3045_s9, 256 }
 0x4f5   : > { %s2355_s0 = scalar_lea.hbm %s3898_s26, %s2710_s3  ;;  %p3047_p10 = scmp.lt.s32.totalorder %s2358_s17, %s3045_s9 }
 0x4f6   : > { %p3043_p9 = pneg %p3042_p8  ;;  %p3048_p11 = scmp.lt.s32.totalorder %s3046_s13, %s3040_s28 }
 0x4f8   : > { %p3049_p13 = por %p3048_p11, %p3047_p10 }
 0x4fa   : > { %p3050_p0 = pnand %p3049_p13, %p3043_p9 }
 0x4fc   : > { %3053 = shalt.err (!%p3050_p0)
}
 0x4fd   : > { %s3054_s15 = scalar_lea.hbm %s2355_s0, 128  ;;  %s3058_s1 = scalar_lea.hbm %s3898_s26, 768 }
 0x4fe   : > { %p3055_p1 = scmp.ne.s32.totalorder %s2355_s0, %s3054_s15  ;;  %p3059_p4 = scmp.lt.s32.totalorder %s2355_s0, %s3898_s26 }
 0x4ff   : > { %p3060_p5 = scmp.lt.s32.totalorder %s3058_s1, %s3054_s15 }
 0x500   : > { %p3056_p2 = pnand %p3055_p1, %p3280_p7 }
 0x501   : > { %p3061_p6 = por %p3060_p5, %p3059_p4 }
 0x502   : > { %p3057_p3 = pneg %p3056_p2 }
 0x504   : > { %p3062_p8 = pnand %p3061_p6, %p3057_p3 }
 0x506   : > { %3065 = shalt.err (!%p3062_p8)
}
 0x507   : > { %2711 = dma.vmem_to_hbm [thread:$0]  (%p3280_p7), %s2358_s17, 128, %s2355_s0, %s2343_s16  }
 0x508 PF: > { %s3900_s14 = sld [smem:[#allocation12_spill]] }
 0x509   : > { %s3901_s18 = sld [smem:[#allocation7_spill]] }
 0x50e   : > { %p2717_p9 = scmp.ge.s32.totalorder %s3900_s14, 2 }
 0x50f   : > { %s2369_s22 = sand.u32 1, %s3901_s18  }
 0x510   : > { %p2714_p10 = pnand %p2717_p9, %p3288_p12  ;;  %s2370_s20 = scalar_lea.sflag [#allocation5], %s2369_s22 }
 0x512   : > { %p2715_p11 = pneg %p2714_p10 }
 0x514   : > { %3107 = dma.done.wait (%p2715_p11), %s2370_s20, 128  }
 0x515   : > { %3109 = vsyncadd (%p2715_p11), %s2370_s20, 4294967168  ;;  %s22_s18 = sadd.s32 1, %s3900_s14   ;;  %s3903_s23 = sld [smem:[#allocation8_spill]] }
 0x516   : > { %p19_p13 = scmp.ge.s32.totalorder %s22_s18, 14   ;;  %s3904_s11 = sld [smem:[#allocation16_spill]] }
 0x517   : > { %s3905_s12 = sld [smem:[#allocation9_spill]]  ;;  %s3911_s30 = smov %s3116_s10 }
 0x518   : > { %s3906_s13 = sld [smem:[#allocation17_spill]]  ;;  %21 = sbr.rel (!%p19_p13) target bundleno = 12 (0xc), region = 162 }
 0x519   : > { %s3907_s14 = sld [smem:[#allocation10_spill]] }
 0x51a   : > { %s3908_s15 = sld [smem:[#allocation11_spill]] }
 0x51b   : > { %s3909_s16 = sld [smem:[#allocation13_spill]]  ;;  %s3912_s10 = smov %s3903_s23 }
 0x51c   : > { %s3910_s17 = sld [smem:[#allocation14_spill]] }
 0x51d   :  { %2375 = vsyncpa [#allocation5], 1 }
 0x51e   :  { %2377 = vsyncpa [#allocation5 + $0x1], 1 }

</bundles_post_ra>
